<compile_context>
chip_gen: v7x
topology: tpu7x:2x2x1
jax: 0.10.0
libtpu: 0.0.40
codegen_flags: <defaults>
</compile_context>

<pallas_src>
import jax
import jax.numpy as jnp
from jax.experimental import pallas as pl
from jax.experimental.pallas import tpu as pltpu


def _round_up(x, m):
    return (x + m - 1) // m * m


def _gru_kernel(x_ref, h0_ref, wih_ref, whh_ref, bi_ref, bhn_ref, out_ref):
    # Shapes (all static):
    #   x_ref   : (T*Bp, F)     bf16   time-major, batch padded to Bp
    #   h0_ref  : (Bp, Hp)      f32
    #   wih_ref : (F, 3*Hp)     bf16   fused W_ih^T, gate columns [r | z | n]
    #   whh_ref : (Hp, 3*Hp)    bf16   fused W_hh^T, gate columns [r | z | n]
    #   bi_ref  : (1, 3*Hp)     f32    [b_ir+b_hr | b_iz+b_hz | b_in]
    #   bhn_ref : (1, Hp)       f32    b_hn (kept separate: multiplied by r)
    #   out_ref : (Bp, Hp)      f32
    tb, _ = x_ref.shape
    b_pad, h_pad = out_ref.shape
    seq_len = tb // b_pad

    # ---- Phase 1: hoisted input projection for ALL time steps.
    # One fused (T*Bp, F) @ (F, 3*Hp) MXU matmul, biases folded in; kept as SSA
    # values (no VMEM scratch) so it can overlap the start of the recurrence.
    gi = jnp.dot(x_ref[...], wih_ref[...],
                 preferred_element_type=jnp.float32) + bi_ref[...]      # (T*Bp, 3*Hp) f32

    w_hh = whh_ref[...]                                                 # (Hp, 3*Hp) bf16
    b_hn = bhn_ref[...]                                                 # (1, Hp)    f32

    # ---- Phase 2: serial recurrence, fully unrolled (static t -> static,
    # sublane/lane-tile-aligned slices of gi and of the fused gate output).
    h = h0_ref[...]                                                     # (Bp, Hp) f32
    for t in range(seq_len):
        gh = jnp.dot(h.astype(jnp.bfloat16), w_hh,
                     preferred_element_type=jnp.float32)                # (Bp, 3*Hp) f32
        gi_t = gi[t * b_pad:(t + 1) * b_pad, :]                         # (Bp, 3*Hp)
        r = jax.nn.sigmoid(gi_t[:, :h_pad] + gh[:, :h_pad])
        z = jax.nn.sigmoid(gi_t[:, h_pad:2 * h_pad] + gh[:, h_pad:2 * h_pad])
        n = jnp.tanh(gi_t[:, 2 * h_pad:] + r * (gh[:, 2 * h_pad:] + b_hn))
        h = n + z * (h - n)                                             # == (1-z)*n + z*h

    out_ref[...] = h


def pack_gru_params(w_ih, w_hh, b_ih, b_hh):
    """Pack PyTorch-layout GRU params into fused MXU-friendly tiles.

    Call ONCE outside the per-call path (the packing HLO would otherwise
    re-execute every step and dominate this microsecond-scale kernel).

    w_ih: (3H, F)  w_hh: (3H, H)  b_ih, b_hh: (3H,)   gates in [r, z, n] order.
    Returns (wih_p (F,3Hp) bf16, whh_p (Hp,3Hp) bf16, bi_p (1,3Hp) f32, bhn_p (1,Hp) f32).
    Zero padding is load-bearing: padded lanes must stay exactly zero.
    """
    three_h, F = w_ih.shape
    H = three_h // 3
    Hp = _round_up(H, 128)

    def fuse(w, in_dim, in_pad):
        # (3H, in_dim) -> (in_pad, 3*Hp): per-gate transpose, zero-pad, lane-concat.
        w3 = jnp.transpose(w.astype(jnp.float32).reshape(3, H, in_dim), (0, 2, 1))
        w3 = jnp.pad(w3, ((0, 0), (0, in_pad - in_dim), (0, Hp - H)))
        return jnp.concatenate([w3[0], w3[1], w3[2]], axis=-1).astype(jnp.bfloat16)

    wih_p = fuse(w_ih, F, F)         # (F, 3*Hp)
    whh_p = fuse(w_hh, H, Hp)        # (Hp, 3*Hp)  contraction padded to match padded h

    bi3 = b_ih.astype(jnp.float32).reshape(3, H)
    bh3 = b_hh.astype(jnp.float32).reshape(3, H)
    # r/z gates: b_ih and b_hh just add -> fold into one bias (applied in phase 1).
    # n gate: b_hn is multiplied by r in PyTorch's GRU, keep it separate.
    bi = jnp.stack([bi3[0] + bh3[0], bi3[1] + bh3[1], bi3[2]])
    bi_p = jnp.pad(bi, ((0, 0), (0, Hp - H))).reshape(1, 3 * Hp)
    bhn_p = jnp.pad(bh3[2], (0, Hp - H)).reshape(1, Hp)
    return wih_p, whh_p, bi_p, bhn_p


@jax.jit
def gru_encode(data, h0, wih_p, whh_p, bi_p, bhn_p):
    """Runs the single-layer GRU over `data`, returns the final hidden state.

    data : (T, B, F) f32      h0 : (1, B, H) f32
    wih_p/whh_p/bi_p/bhn_p : packed params from pack_gru_params().
    returns: (1, B, H) f32
    """
    T, B, F = data.shape
    H = h0.shape[-1]
    Bp = _round_up(B, 8)        # sublane alignment
    Hp = whh_p.shape[0]         # lane alignment (one lane-dense tile per gate)

    x_p = jnp.pad(data.astype(jnp.float32), ((0, 0), (0, Bp - B), (0, 0)))
    x_p = x_p.astype(jnp.bfloat16).reshape(T * Bp, F)
    h0_p = jnp.pad(h0[0].astype(jnp.float32), ((0, Bp - B), (0, Hp - H)))

    out_p = pl.pallas_call(
        _gru_kernel,
        out_shape=jax.ShapeDtypeStruct((Bp, Hp), jnp.float32),
        in_specs=[pl.BlockSpec(memory_space=pltpu.MemorySpace.VMEM) for _ in range(6)],
        out_specs=pl.BlockSpec(memory_space=pltpu.MemorySpace.VMEM),
    )(x_p, h0_p, wih_p, whh_p, bi_p, bhn_p)

    return out_p[:B, :H][None]


def _gru_reference(data, h0, w_ih, w_hh, b_ih, b_hh, matmul_dtype=jnp.float32):
    """Pure-JAX reference (PyTorch GRU equations).

    `matmul_dtype` lets us mirror the kernel's bf16-input / f32-accumulate MXU
    math for a tight structural check, or run exact f32 for a semantic check.
    """
    H = h0.shape[-1]
    w_ih_m = w_ih.astype(matmul_dtype)
    w_hh_m = w_hh.astype(matmul_dtype)

    def step(h, x_t):
        gi = jnp.dot(x_t.astype(matmul_dtype), w_ih_m.T,
                     preferred_element_type=jnp.float32) + b_ih
        gh = jnp.dot(h.astype(matmul_dtype), w_hh_m.T,
                     preferred_element_type=jnp.float32) + b_hh
        i_r, i_z, i_n = gi[:, :H], gi[:, H:2 * H], gi[:, 2 * H:]
        h_r, h_z, h_n = gh[:, :H], gh[:, H:2 * H], gh[:, 2 * H:]
        r = jax.nn.sigmoid(i_r + h_r)
        z = jax.nn.sigmoid(i_z + h_z)
        n = jnp.tanh(i_n + r * h_n)
        h_new = (1.0 - z) * n + z * h
        return h_new, None

    h_final, _ = jax.lax.scan(step, h0[0], data)
    return h_final[None]


if __name__ == "__main__":
    frame_size = 16
    hidden_units = 32
    seq_len = 8
    batch = 4

    key = jax.random.PRNGKey(0)
    (k_data, k_h0, k_wih, k_whh, k_bih, k_bhh, k_lin_w, k_lin_b) = jax.random.split(key, 8)

    # Deterministic parameter init (PyTorch GRU uses U(-1/sqrt(H), 1/sqrt(H))).
    bound = 1.0 / jnp.sqrt(jnp.float32(hidden_units))
    w_ih = jax.random.uniform(k_wih, (3 * hidden_units, frame_size),
                              minval=-bound, maxval=bound, dtype=jnp.float32)
    w_hh = jax.random.uniform(k_whh, (3 * hidden_units, hidden_units),
                              minval=-bound, maxval=bound, dtype=jnp.float32)
    b_ih = jax.random.uniform(k_bih, (3 * hidden_units,),
                              minval=-bound, maxval=bound, dtype=jnp.float32)
    b_hh = jax.random.uniform(k_bhh, (3 * hidden_units,),
                              minval=-bound, maxval=bound, dtype=jnp.float32)
    # encoder_linear parameters exist in the module but are unused in forward().
    _lin_w = jax.random.uniform(k_lin_w, (frame_size, hidden_units),
                                minval=-bound, maxval=bound, dtype=jnp.float32)
    _lin_b = jax.random.uniform(k_lin_b, (frame_size,),
                                minval=-bound, maxval=bound, dtype=jnp.float32)

    # Inputs: (seq_len, batch, frame_size); h0 deterministic stand-in for torch.randn.
    data = jax.random.normal(k_data, (seq_len, batch, frame_size), dtype=jnp.float32)
    h0 = jax.random.normal(k_h0, (1, batch, hidden_units), dtype=jnp.float32)

    # One-time weight packing (hoisted out of the per-call jit path).
    packed = pack_gru_params(w_ih, w_hh, b_ih, b_hh)
    packed = jax.tree_util.tree_map(jax.block_until_ready, packed)

    out = jax.block_until_ready(gru_encode(data, h0, *packed))
    assert out.shape == (1, batch, hidden_units)

    # Tight check vs. a reference that mirrors the kernel's bf16-MXU / f32-accumulate math.
    ref_match = _gru_reference(data, h0, w_ih, w_hh, b_ih, b_hh, matmul_dtype=jnp.bfloat16)
    assert jnp.allclose(out, ref_match, atol=5e-3, rtol=5e-3), "mismatch vs bf16-matched reference"

    # Loose sanity check vs. the exact f32 PyTorch-equation reference (bf16 MXU approximation).
    ref_exact = _gru_reference(data, h0, w_ih, w_hh, b_ih, b_hh, matmul_dtype=jnp.float32)
    assert jnp.allclose(out, ref_exact, atol=1e-1, rtol=1e-1), "mismatch vs f32 reference"

    print("KERNEL_OK")
</pallas_src>

<mosaic_0001>
module attributes {stable_mosaic.version = 11 : i64} {
  func.func @_gru_kernel(%arg0: memref<64x16xbf16, #tpu.memory_space<vmem>>, %arg1: memref<8x128xf32, #tpu.memory_space<vmem>>, %arg2: memref<16x384xbf16, #tpu.memory_space<vmem>>, %arg3: memref<128x384xbf16, #tpu.memory_space<vmem>>, %arg4: memref<1x384xf32, #tpu.memory_space<vmem>>, %arg5: memref<1x128xf32, #tpu.memory_space<vmem>>, %arg6: memref<8x128xf32, #tpu.memory_space<vmem>>) attributes {dimension_semantics = [], scalar_prefetch = 0 : i64, scratch_operands = 0 : i64, tpu.core_type = #tpu.core_type<tc>} {
    %c0 = arith.constant 0 : index
    %c0_0 = arith.constant 0 : index
    %0 = vector.load %arg0[%c0, %c0_0] : memref<64x16xbf16, #tpu.memory_space<vmem>>, vector<64x16xbf16>
    %c0_1 = arith.constant 0 : index
    %c0_2 = arith.constant 0 : index
    %1 = vector.load %arg2[%c0_1, %c0_2] : memref<16x384xbf16, #tpu.memory_space<vmem>>, vector<16x384xbf16>
    %cst = arith.constant dense<0.000000e+00> : vector<64x384xf32>
    %2 = tpu.matmul %0, %1, %cst {dimension_numbers = #tpu.dot_dimension_numbers<[1], [0], [0], [1], [0, 0, 1, 1], [], []>} : vector<64x16xbf16>, vector<16x384xbf16>, vector<64x384xf32> -> vector<64x384xf32>
    %c0_3 = arith.constant 0 : index
    %c0_4 = arith.constant 0 : index
    %3 = vector.load %arg4[%c0_3, %c0_4] : memref<1x384xf32, #tpu.memory_space<vmem>>, vector<1x384xf32>
    %4 = vector.broadcast %3 : vector<1x384xf32> to vector<64x384xf32>
    %5 = arith.addf %2, %4 : vector<64x384xf32>
    %c0_5 = arith.constant 0 : index
    %c0_6 = arith.constant 0 : index
    %6 = vector.load %arg3[%c0_5, %c0_6] : memref<128x384xbf16, #tpu.memory_space<vmem>>, vector<128x384xbf16>
    %c0_7 = arith.constant 0 : index
    %c0_8 = arith.constant 0 : index
    %7 = vector.load %arg5[%c0_7, %c0_8] : memref<1x128xf32, #tpu.memory_space<vmem>>, vector<1x128xf32>
    %c0_9 = arith.constant 0 : index
    %c0_10 = arith.constant 0 : index
    %8 = vector.load %arg1[%c0_9, %c0_10] : memref<8x128xf32, #tpu.memory_space<vmem>>, vector<8x128xf32>
    %9 = arith.truncf %8 : vector<8x128xf32> to vector<8x128xbf16>
    %cst_11 = arith.constant dense<0.000000e+00> : vector<8x384xf32>
    %10 = tpu.matmul %9, %6, %cst_11 {dimension_numbers = #tpu.dot_dimension_numbers<[1], [0], [0], [1], [0, 0, 1, 1], [], []>} : vector<8x128xbf16>, vector<128x384xbf16>, vector<8x384xf32> -> vector<8x384xf32>
    %11 = vector.extract_strided_slice %5 {offsets = [0, 0], sizes = [8, 384], strides = [1, 1]} : vector<64x384xf32> to vector<8x384xf32>
    %12 = vector.extract_strided_slice %11 {offsets = [0, 0], sizes = [8, 128], strides = [1, 1]} : vector<8x384xf32> to vector<8x128xf32>
    %13 = vector.extract_strided_slice %10 {offsets = [0, 0], sizes = [8, 128], strides = [1, 1]} : vector<8x384xf32> to vector<8x128xf32>
    %14 = arith.addf %12, %13 : vector<8x128xf32>
    %15 = arith.negf %14 : vector<8x128xf32>
    %16 = math.exp %15 : vector<8x128xf32>
    %cst_12 = arith.constant 1.000000e+00 : f32
    %17 = vector.broadcast %cst_12 : f32 to vector<8x128xf32>
    %18 = arith.addf %17, %16 : vector<8x128xf32>
    %19 = arith.divf %17, %18 : vector<8x128xf32>
    %20 = vector.extract_strided_slice %11 {offsets = [0, 128], sizes = [8, 128], strides = [1, 1]} : vector<8x384xf32> to vector<8x128xf32>
    %21 = vector.extract_strided_slice %10 {offsets = [0, 128], sizes = [8, 128], strides = [1, 1]} : vector<8x384xf32> to vector<8x128xf32>
    %22 = arith.addf %20, %21 : vector<8x128xf32>
    %23 = arith.negf %22 : vector<8x128xf32>
    %24 = math.exp %23 : vector<8x128xf32>
    %cst_13 = arith.constant 1.000000e+00 : f32
    %25 = vector.broadcast %cst_13 : f32 to vector<8x128xf32>
    %26 = arith.addf %25, %24 : vector<8x128xf32>
    %27 = arith.divf %25, %26 : vector<8x128xf32>
    %28 = vector.extract_strided_slice %11 {offsets = [0, 256], sizes = [8, 128], strides = [1, 1]} : vector<8x384xf32> to vector<8x128xf32>
    %29 = vector.extract_strided_slice %10 {offsets = [0, 256], sizes = [8, 128], strides = [1, 1]} : vector<8x384xf32> to vector<8x128xf32>
    %30 = vector.broadcast %7 : vector<1x128xf32> to vector<8x128xf32>
    %31 = arith.addf %29, %30 : vector<8x128xf32>
    %32 = arith.mulf %19, %31 : vector<8x128xf32>
    %33 = arith.addf %28, %32 : vector<8x128xf32>
    %34 = math.tanh %33 : vector<8x128xf32>
    %35 = arith.subf %8, %34 : vector<8x128xf32>
    %36 = arith.mulf %27, %35 : vector<8x128xf32>
    %37 = arith.addf %34, %36 : vector<8x128xf32>
    %38 = arith.truncf %37 : vector<8x128xf32> to vector<8x128xbf16>
    %cst_14 = arith.constant dense<0.000000e+00> : vector<8x384xf32>
    %39 = tpu.matmul %38, %6, %cst_14 {dimension_numbers = #tpu.dot_dimension_numbers<[1], [0], [0], [1], [0, 0, 1, 1], [], []>} : vector<8x128xbf16>, vector<128x384xbf16>, vector<8x384xf32> -> vector<8x384xf32>
    %40 = vector.extract_strided_slice %5 {offsets = [8, 0], sizes = [8, 384], strides = [1, 1]} : vector<64x384xf32> to vector<8x384xf32>
    %41 = vector.extract_strided_slice %40 {offsets = [0, 0], sizes = [8, 128], strides = [1, 1]} : vector<8x384xf32> to vector<8x128xf32>
    %42 = vector.extract_strided_slice %39 {offsets = [0, 0], sizes = [8, 128], strides = [1, 1]} : vector<8x384xf32> to vector<8x128xf32>
    %43 = arith.addf %41, %42 : vector<8x128xf32>
    %44 = arith.negf %43 : vector<8x128xf32>
    %45 = math.exp %44 : vector<8x128xf32>
    %cst_15 = arith.constant 1.000000e+00 : f32
    %46 = vector.broadcast %cst_15 : f32 to vector<8x128xf32>
    %47 = arith.addf %46, %45 : vector<8x128xf32>
    %48 = arith.divf %46, %47 : vector<8x128xf32>
    %49 = vector.extract_strided_slice %40 {offsets = [0, 128], sizes = [8, 128], strides = [1, 1]} : vector<8x384xf32> to vector<8x128xf32>
    %50 = vector.extract_strided_slice %39 {offsets = [0, 128], sizes = [8, 128], strides = [1, 1]} : vector<8x384xf32> to vector<8x128xf32>
    %51 = arith.addf %49, %50 : vector<8x128xf32>
    %52 = arith.negf %51 : vector<8x128xf32>
    %53 = math.exp %52 : vector<8x128xf32>
    %cst_16 = arith.constant 1.000000e+00 : f32
    %54 = vector.broadcast %cst_16 : f32 to vector<8x128xf32>
    %55 = arith.addf %54, %53 : vector<8x128xf32>
    %56 = arith.divf %54, %55 : vector<8x128xf32>
    %57 = vector.extract_strided_slice %40 {offsets = [0, 256], sizes = [8, 128], strides = [1, 1]} : vector<8x384xf32> to vector<8x128xf32>
    %58 = vector.extract_strided_slice %39 {offsets = [0, 256], sizes = [8, 128], strides = [1, 1]} : vector<8x384xf32> to vector<8x128xf32>
    %59 = vector.broadcast %7 : vector<1x128xf32> to vector<8x128xf32>
    %60 = arith.addf %58, %59 : vector<8x128xf32>
    %61 = arith.mulf %48, %60 : vector<8x128xf32>
    %62 = arith.addf %57, %61 : vector<8x128xf32>
    %63 = math.tanh %62 : vector<8x128xf32>
    %64 = arith.subf %37, %63 : vector<8x128xf32>
    %65 = arith.mulf %56, %64 : vector<8x128xf32>
    %66 = arith.addf %63, %65 : vector<8x128xf32>
    %67 = arith.truncf %66 : vector<8x128xf32> to vector<8x128xbf16>
    %cst_17 = arith.constant dense<0.000000e+00> : vector<8x384xf32>
    %68 = tpu.matmul %67, %6, %cst_17 {dimension_numbers = #tpu.dot_dimension_numbers<[1], [0], [0], [1], [0, 0, 1, 1], [], []>} : vector<8x128xbf16>, vector<128x384xbf16>, vector<8x384xf32> -> vector<8x384xf32>
    %69 = vector.extract_strided_slice %5 {offsets = [16, 0], sizes = [8, 384], strides = [1, 1]} : vector<64x384xf32> to vector<8x384xf32>
    %70 = vector.extract_strided_slice %69 {offsets = [0, 0], sizes = [8, 128], strides = [1, 1]} : vector<8x384xf32> to vector<8x128xf32>
    %71 = vector.extract_strided_slice %68 {offsets = [0, 0], sizes = [8, 128], strides = [1, 1]} : vector<8x384xf32> to vector<8x128xf32>
    %72 = arith.addf %70, %71 : vector<8x128xf32>
    %73 = arith.negf %72 : vector<8x128xf32>
    %74 = math.exp %73 : vector<8x128xf32>
    %cst_18 = arith.constant 1.000000e+00 : f32
    %75 = vector.broadcast %cst_18 : f32 to vector<8x128xf32>
    %76 = arith.addf %75, %74 : vector<8x128xf32>
    %77 = arith.divf %75, %76 : vector<8x128xf32>
    %78 = vector.extract_strided_slice %69 {offsets = [0, 128], sizes = [8, 128], strides = [1, 1]} : vector<8x384xf32> to vector<8x128xf32>
    %79 = vector.extract_strided_slice %68 {offsets = [0, 128], sizes = [8, 128], strides = [1, 1]} : vector<8x384xf32> to vector<8x128xf32>
    %80 = arith.addf %78, %79 : vector<8x128xf32>
    %81 = arith.negf %80 : vector<8x128xf32>
    %82 = math.exp %81 : vector<8x128xf32>
    %cst_19 = arith.constant 1.000000e+00 : f32
    %83 = vector.broadcast %cst_19 : f32 to vector<8x128xf32>
    %84 = arith.addf %83, %82 : vector<8x128xf32>
    %85 = arith.divf %83, %84 : vector<8x128xf32>
    %86 = vector.extract_strided_slice %69 {offsets = [0, 256], sizes = [8, 128], strides = [1, 1]} : vector<8x384xf32> to vector<8x128xf32>
    %87 = vector.extract_strided_slice %68 {offsets = [0, 256], sizes = [8, 128], strides = [1, 1]} : vector<8x384xf32> to vector<8x128xf32>
    %88 = vector.broadcast %7 : vector<1x128xf32> to vector<8x128xf32>
    %89 = arith.addf %87, %88 : vector<8x128xf32>
    %90 = arith.mulf %77, %89 : vector<8x128xf32>
    %91 = arith.addf %86, %90 : vector<8x128xf32>
    %92 = math.tanh %91 : vector<8x128xf32>
    %93 = arith.subf %66, %92 : vector<8x128xf32>
    %94 = arith.mulf %85, %93 : vector<8x128xf32>
    %95 = arith.addf %92, %94 : vector<8x128xf32>
    %96 = arith.truncf %95 : vector<8x128xf32> to vector<8x128xbf16>
    %cst_20 = arith.constant dense<0.000000e+00> : vector<8x384xf32>
    %97 = tpu.matmul %96, %6, %cst_20 {dimension_numbers = #tpu.dot_dimension_numbers<[1], [0], [0], [1], [0, 0, 1, 1], [], []>} : vector<8x128xbf16>, vector<128x384xbf16>, vector<8x384xf32> -> vector<8x384xf32>
    %98 = vector.extract_strided_slice %5 {offsets = [24, 0], sizes = [8, 384], strides = [1, 1]} : vector<64x384xf32> to vector<8x384xf32>
    %99 = vector.extract_strided_slice %98 {offsets = [0, 0], sizes = [8, 128], strides = [1, 1]} : vector<8x384xf32> to vector<8x128xf32>
    %100 = vector.extract_strided_slice %97 {offsets = [0, 0], sizes = [8, 128], strides = [1, 1]} : vector<8x384xf32> to vector<8x128xf32>
    %101 = arith.addf %99, %100 : vector<8x128xf32>
    %102 = arith.negf %101 : vector<8x128xf32>
    %103 = math.exp %102 : vector<8x128xf32>
    %cst_21 = arith.constant 1.000000e+00 : f32
    %104 = vector.broadcast %cst_21 : f32 to vector<8x128xf32>
    %105 = arith.addf %104, %103 : vector<8x128xf32>
    %106 = arith.divf %104, %105 : vector<8x128xf32>
    %107 = vector.extract_strided_slice %98 {offsets = [0, 128], sizes = [8, 128], strides = [1, 1]} : vector<8x384xf32> to vector<8x128xf32>
    %108 = vector.extract_strided_slice %97 {offsets = [0, 128], sizes = [8, 128], strides = [1, 1]} : vector<8x384xf32> to vector<8x128xf32>
    %109 = arith.addf %107, %108 : vector<8x128xf32>
    %110 = arith.negf %109 : vector<8x128xf32>
    %111 = math.exp %110 : vector<8x128xf32>
    %cst_22 = arith.constant 1.000000e+00 : f32
    %112 = vector.broadcast %cst_22 : f32 to vector<8x128xf32>
    %113 = arith.addf %112, %111 : vector<8x128xf32>
    %114 = arith.divf %112, %113 : vector<8x128xf32>
    %115 = vector.extract_strided_slice %98 {offsets = [0, 256], sizes = [8, 128], strides = [1, 1]} : vector<8x384xf32> to vector<8x128xf32>
    %116 = vector.extract_strided_slice %97 {offsets = [0, 256], sizes = [8, 128], strides = [1, 1]} : vector<8x384xf32> to vector<8x128xf32>
    %117 = vector.broadcast %7 : vector<1x128xf32> to vector<8x128xf32>
    %118 = arith.addf %116, %117 : vector<8x128xf32>
    %119 = arith.mulf %106, %118 : vector<8x128xf32>
    %120 = arith.addf %115, %119 : vector<8x128xf32>
    %121 = math.tanh %120 : vector<8x128xf32>
    %122 = arith.subf %95, %121 : vector<8x128xf32>
    %123 = arith.mulf %114, %122 : vector<8x128xf32>
    %124 = arith.addf %121, %123 : vector<8x128xf32>
    %125 = arith.truncf %124 : vector<8x128xf32> to vector<8x128xbf16>
    %cst_23 = arith.constant dense<0.000000e+00> : vector<8x384xf32>
    %126 = tpu.matmul %125, %6, %cst_23 {dimension_numbers = #tpu.dot_dimension_numbers<[1], [0], [0], [1], [0, 0, 1, 1], [], []>} : vector<8x128xbf16>, vector<128x384xbf16>, vector<8x384xf32> -> vector<8x384xf32>
    %127 = vector.extract_strided_slice %5 {offsets = [32, 0], sizes = [8, 384], strides = [1, 1]} : vector<64x384xf32> to vector<8x384xf32>
    %128 = vector.extract_strided_slice %127 {offsets = [0, 0], sizes = [8, 128], strides = [1, 1]} : vector<8x384xf32> to vector<8x128xf32>
    %129 = vector.extract_strided_slice %126 {offsets = [0, 0], sizes = [8, 128], strides = [1, 1]} : vector<8x384xf32> to vector<8x128xf32>
    %130 = arith.addf %128, %129 : vector<8x128xf32>
    %131 = arith.negf %130 : vector<8x128xf32>
    %132 = math.exp %131 : vector<8x128xf32>
    %cst_24 = arith.constant 1.000000e+00 : f32
    %133 = vector.broadcast %cst_24 : f32 to vector<8x128xf32>
    %134 = arith.addf %133, %132 : vector<8x128xf32>
    %135 = arith.divf %133, %134 : vector<8x128xf32>
    %136 = vector.extract_strided_slice %127 {offsets = [0, 128], sizes = [8, 128], strides = [1, 1]} : vector<8x384xf32> to vector<8x128xf32>
    %137 = vector.extract_strided_slice %126 {offsets = [0, 128], sizes = [8, 128], strides = [1, 1]} : vector<8x384xf32> to vector<8x128xf32>
    %138 = arith.addf %136, %137 : vector<8x128xf32>
    %139 = arith.negf %138 : vector<8x128xf32>
    %140 = math.exp %139 : vector<8x128xf32>
    %cst_25 = arith.constant 1.000000e+00 : f32
    %141 = vector.broadcast %cst_25 : f32 to vector<8x128xf32>
    %142 = arith.addf %141, %140 : vector<8x128xf32>
    %143 = arith.divf %141, %142 : vector<8x128xf32>
    %144 = vector.extract_strided_slice %127 {offsets = [0, 256], sizes = [8, 128], strides = [1, 1]} : vector<8x384xf32> to vector<8x128xf32>
    %145 = vector.extract_strided_slice %126 {offsets = [0, 256], sizes = [8, 128], strides = [1, 1]} : vector<8x384xf32> to vector<8x128xf32>
    %146 = vector.broadcast %7 : vector<1x128xf32> to vector<8x128xf32>
    %147 = arith.addf %145, %146 : vector<8x128xf32>
    %148 = arith.mulf %135, %147 : vector<8x128xf32>
    %149 = arith.addf %144, %148 : vector<8x128xf32>
    %150 = math.tanh %149 : vector<8x128xf32>
    %151 = arith.subf %124, %150 : vector<8x128xf32>
    %152 = arith.mulf %143, %151 : vector<8x128xf32>
    %153 = arith.addf %150, %152 : vector<8x128xf32>
    %154 = arith.truncf %153 : vector<8x128xf32> to vector<8x128xbf16>
    %cst_26 = arith.constant dense<0.000000e+00> : vector<8x384xf32>
    %155 = tpu.matmul %154, %6, %cst_26 {dimension_numbers = #tpu.dot_dimension_numbers<[1], [0], [0], [1], [0, 0, 1, 1], [], []>} : vector<8x128xbf16>, vector<128x384xbf16>, vector<8x384xf32> -> vector<8x384xf32>
    %156 = vector.extract_strided_slice %5 {offsets = [40, 0], sizes = [8, 384], strides = [1, 1]} : vector<64x384xf32> to vector<8x384xf32>
    %157 = vector.extract_strided_slice %156 {offsets = [0, 0], sizes = [8, 128], strides = [1, 1]} : vector<8x384xf32> to vector<8x128xf32>
    %158 = vector.extract_strided_slice %155 {offsets = [0, 0], sizes = [8, 128], strides = [1, 1]} : vector<8x384xf32> to vector<8x128xf32>
    %159 = arith.addf %157, %158 : vector<8x128xf32>
    %160 = arith.negf %159 : vector<8x128xf32>
    %161 = math.exp %160 : vector<8x128xf32>
    %cst_27 = arith.constant 1.000000e+00 : f32
    %162 = vector.broadcast %cst_27 : f32 to vector<8x128xf32>
    %163 = arith.addf %162, %161 : vector<8x128xf32>
    %164 = arith.divf %162, %163 : vector<8x128xf32>
    %165 = vector.extract_strided_slice %156 {offsets = [0, 128], sizes = [8, 128], strides = [1, 1]} : vector<8x384xf32> to vector<8x128xf32>
    %166 = vector.extract_strided_slice %155 {offsets = [0, 128], sizes = [8, 128], strides = [1, 1]} : vector<8x384xf32> to vector<8x128xf32>
    %167 = arith.addf %165, %166 : vector<8x128xf32>
    %168 = arith.negf %167 : vector<8x128xf32>
    %169 = math.exp %168 : vector<8x128xf32>
    %cst_28 = arith.constant 1.000000e+00 : f32
    %170 = vector.broadcast %cst_28 : f32 to vector<8x128xf32>
    %171 = arith.addf %170, %169 : vector<8x128xf32>
    %172 = arith.divf %170, %171 : vector<8x128xf32>
    %173 = vector.extract_strided_slice %156 {offsets = [0, 256], sizes = [8, 128], strides = [1, 1]} : vector<8x384xf32> to vector<8x128xf32>
    %174 = vector.extract_strided_slice %155 {offsets = [0, 256], sizes = [8, 128], strides = [1, 1]} : vector<8x384xf32> to vector<8x128xf32>
    %175 = vector.broadcast %7 : vector<1x128xf32> to vector<8x128xf32>
    %176 = arith.addf %174, %175 : vector<8x128xf32>
    %177 = arith.mulf %164, %176 : vector<8x128xf32>
    %178 = arith.addf %173, %177 : vector<8x128xf32>
    %179 = math.tanh %178 : vector<8x128xf32>
    %180 = arith.subf %153, %179 : vector<8x128xf32>
    %181 = arith.mulf %172, %180 : vector<8x128xf32>
    %182 = arith.addf %179, %181 : vector<8x128xf32>
    %183 = arith.truncf %182 : vector<8x128xf32> to vector<8x128xbf16>
    %cst_29 = arith.constant dense<0.000000e+00> : vector<8x384xf32>
    %184 = tpu.matmul %183, %6, %cst_29 {dimension_numbers = #tpu.dot_dimension_numbers<[1], [0], [0], [1], [0, 0, 1, 1], [], []>} : vector<8x128xbf16>, vector<128x384xbf16>, vector<8x384xf32> -> vector<8x384xf32>
    %185 = vector.extract_strided_slice %5 {offsets = [48, 0], sizes = [8, 384], strides = [1, 1]} : vector<64x384xf32> to vector<8x384xf32>
    %186 = vector.extract_strided_slice %185 {offsets = [0, 0], sizes = [8, 128], strides = [1, 1]} : vector<8x384xf32> to vector<8x128xf32>
    %187 = vector.extract_strided_slice %184 {offsets = [0, 0], sizes = [8, 128], strides = [1, 1]} : vector<8x384xf32> to vector<8x128xf32>
    %188 = arith.addf %186, %187 : vector<8x128xf32>
    %189 = arith.negf %188 : vector<8x128xf32>
    %190 = math.exp %189 : vector<8x128xf32>
    %cst_30 = arith.constant 1.000000e+00 : f32
    %191 = vector.broadcast %cst_30 : f32 to vector<8x128xf32>
    %192 = arith.addf %191, %190 : vector<8x128xf32>
    %193 = arith.divf %191, %192 : vector<8x128xf32>
    %194 = vector.extract_strided_slice %185 {offsets = [0, 128], sizes = [8, 128], strides = [1, 1]} : vector<8x384xf32> to vector<8x128xf32>
    %195 = vector.extract_strided_slice %184 {offsets = [0, 128], sizes = [8, 128], strides = [1, 1]} : vector<8x384xf32> to vector<8x128xf32>
    %196 = arith.addf %194, %195 : vector<8x128xf32>
    %197 = arith.negf %196 : vector<8x128xf32>
    %198 = math.exp %197 : vector<8x128xf32>
    %cst_31 = arith.constant 1.000000e+00 : f32
    %199 = vector.broadcast %cst_31 : f32 to vector<8x128xf32>
    %200 = arith.addf %199, %198 : vector<8x128xf32>
    %201 = arith.divf %199, %200 : vector<8x128xf32>
    %202 = vector.extract_strided_slice %185 {offsets = [0, 256], sizes = [8, 128], strides = [1, 1]} : vector<8x384xf32> to vector<8x128xf32>
    %203 = vector.extract_strided_slice %184 {offsets = [0, 256], sizes = [8, 128], strides = [1, 1]} : vector<8x384xf32> to vector<8x128xf32>
    %204 = vector.broadcast %7 : vector<1x128xf32> to vector<8x128xf32>
    %205 = arith.addf %203, %204 : vector<8x128xf32>
    %206 = arith.mulf %193, %205 : vector<8x128xf32>
    %207 = arith.addf %202, %206 : vector<8x128xf32>
    %208 = math.tanh %207 : vector<8x128xf32>
    %209 = arith.subf %182, %208 : vector<8x128xf32>
    %210 = arith.mulf %201, %209 : vector<8x128xf32>
    %211 = arith.addf %208, %210 : vector<8x128xf32>
    %212 = arith.truncf %211 : vector<8x128xf32> to vector<8x128xbf16>
    %cst_32 = arith.constant dense<0.000000e+00> : vector<8x384xf32>
    %213 = tpu.matmul %212, %6, %cst_32 {dimension_numbers = #tpu.dot_dimension_numbers<[1], [0], [0], [1], [0, 0, 1, 1], [], []>} : vector<8x128xbf16>, vector<128x384xbf16>, vector<8x384xf32> -> vector<8x384xf32>
    %214 = vector.extract_strided_slice %5 {offsets = [56, 0], sizes = [8, 384], strides = [1, 1]} : vector<64x384xf32> to vector<8x384xf32>
    %215 = vector.extract_strided_slice %214 {offsets = [0, 0], sizes = [8, 128], strides = [1, 1]} : vector<8x384xf32> to vector<8x128xf32>
    %216 = vector.extract_strided_slice %213 {offsets = [0, 0], sizes = [8, 128], strides = [1, 1]} : vector<8x384xf32> to vector<8x128xf32>
    %217 = arith.addf %215, %216 : vector<8x128xf32>
    %218 = arith.negf %217 : vector<8x128xf32>
    %219 = math.exp %218 : vector<8x128xf32>
    %cst_33 = arith.constant 1.000000e+00 : f32
    %220 = vector.broadcast %cst_33 : f32 to vector<8x128xf32>
    %221 = arith.addf %220, %219 : vector<8x128xf32>
    %222 = arith.divf %220, %221 : vector<8x128xf32>
    %223 = vector.extract_strided_slice %214 {offsets = [0, 128], sizes = [8, 128], strides = [1, 1]} : vector<8x384xf32> to vector<8x128xf32>
    %224 = vector.extract_strided_slice %213 {offsets = [0, 128], sizes = [8, 128], strides = [1, 1]} : vector<8x384xf32> to vector<8x128xf32>
    %225 = arith.addf %223, %224 : vector<8x128xf32>
    %226 = arith.negf %225 : vector<8x128xf32>
    %227 = math.exp %226 : vector<8x128xf32>
    %cst_34 = arith.constant 1.000000e+00 : f32
    %228 = vector.broadcast %cst_34 : f32 to vector<8x128xf32>
    %229 = arith.addf %228, %227 : vector<8x128xf32>
    %230 = arith.divf %228, %229 : vector<8x128xf32>
    %231 = vector.extract_strided_slice %214 {offsets = [0, 256], sizes = [8, 128], strides = [1, 1]} : vector<8x384xf32> to vector<8x128xf32>
    %232 = vector.extract_strided_slice %213 {offsets = [0, 256], sizes = [8, 128], strides = [1, 1]} : vector<8x384xf32> to vector<8x128xf32>
    %233 = vector.broadcast %7 : vector<1x128xf32> to vector<8x128xf32>
    %234 = arith.addf %232, %233 : vector<8x128xf32>
    %235 = arith.mulf %222, %234 : vector<8x128xf32>
    %236 = arith.addf %231, %235 : vector<8x128xf32>
    %237 = math.tanh %236 : vector<8x128xf32>
    %238 = arith.subf %211, %237 : vector<8x128xf32>
    %239 = arith.mulf %230, %238 : vector<8x128xf32>
    %240 = arith.addf %237, %239 : vector<8x128xf32>
    %c0_35 = arith.constant 0 : index
    %c0_36 = arith.constant 0 : index
    %241 = vector.load %arg6[%c0_35, %c0_36] : memref<8x128xf32, #tpu.memory_space<vmem>>, vector<8x128xf32>
    tpu.vector_store %arg6[%c0_35, %c0_36], %240 {strides = array<i32>} : memref<8x128xf32, #tpu.memory_space<vmem>>, vector<8x128xf32>,
    return
  }
}

</mosaic_0001>

<bundles_post_ra>
// kernel: gru_encode.1
= control target key start
LH: loop header
LB: loop body
LE: loop exit
PB: predicated region body
PF: predicated region fallthrough
CT: control target
= control target key end

     0   :  { %11 = vsyncpa [#allocation3], 0  ;;  %s1723_s21 = smov [#allocation2]   ;;  %s2245_s0 = inlined_call_operand.vmem [shape: bf16[64,16], index: 0, kind: input, shape index: {}]   ;;  %s2246_s1 = inlined_call_operand.vmem [shape: f32[8,128], index: 1, kind: input, shape index: {}]   ;;  %s2247_s2 = inlined_call_operand.vmem [shape: bf16[16,384], index: 2, kind: input, shape index: {}]   ;;  %s2248_s3 = inlined_call_operand.hbm [shape: bf16[128,384], index: 3, kind: input, shape index: {}]   ;;  %s2249_s4 = inlined_call_operand.vmem [shape: f32[1,384], index: 4, kind: input, shape index: {}]   ;;  %s2250_s5 = inlined_call_operand.vmem [shape: f32[1,128], index: 5, kind: input, shape index: {}]   ;;  %s2251_s6 = inlined_call_operand.vmem [shape: f32[8,128], index: 6, kind: output, shape index: {}]  }
   0x1   :  { %s23_s22 = sshll.u32 %s1723_s21, 4  ;;  %s1699_s25 = scalar_lea.hbm %s2248_s3, 3072  ;;  %s24_s22 = int_to_ptr.vmem [resolvable:$true] %s23_s22 }
   0x2   :  { %p1700_p0 = scmp.ne.s32.totalorder %s2248_s3, %s1699_s25  ;;  %p1703_p1 = scmp.lt.u32.totalorder %s1699_s25, %s2248_s3 }
   0x4   :  { %p1705_p2 = pnand %p1703_p1, %p1700_p0 }
   0x6   :  { %1708 = shalt.err (!%p1705_p2)
}
   0x7   :  { %s1709_s30 = scalar_lea.vmem %s24_s22, 3072  ;;  %p1714_p4 = scmp.lt.s32.totalorder %s24_s22, %s24_s22 }
   0x8   :  { %p1710_p3 = scmp.ne.s32.totalorder %s24_s22, %s1709_s30  ;;  %p1715_p5 = scmp.lt.s32.totalorder %s1709_s30, %s1709_s30 }
   0xa   :  { %p1716_p6 = por %p1715_p5, %p1714_p4 }
   0xc   :  { %p1717_p7 = pnand %p1716_p6, %p1710_p3 }
   0xe   :  { %1720 = shalt.err (!%p1717_p7)
}
   0xf   :  { %s1724_s7 = smov 192   ;;  %s1725_s8 = smov 12  }
  0x10   :  { %29 = dma.hbm_to_vmem [thread:$0]  %s2248_s3, 3072, %s24_s22, [#allocation3], %s1724_s7, %s1724_s7, %s1725_s8  }
  0x11   :  { %1721 = dma.done.wait [#allocation3], 3072  }
  0x12   :  { %1722 = vsyncadd [#allocation3], 4294964224  ;;  %v2252_v0 = vmov 0   ;;  %v1561_v1 = vld [vmem:[%s2247_s2 + $0x4] ss:$12 sps:$4 sm:$0xff]   ;;  %vm103_vm0 = vcmask 130048   ;;  %v52_v35 = vlaneseq }
  0x13   :  { %148 = vmatprep.mubr.bf16.mxu0 %v2252_v0  ;;  %v1563_v2 = vld [vmem:[%s2247_s2] ss:$12 sps:$4 sm:$0xff]   ;;  %116 = vmatprep.subr.bf16.mxu0 %v1561_v1  ;;  %v1786_v4 = vld [vmem:[#allocation2 + $0x4] ss:$12 sps:$4 sm:$0xff]   ;;  %v1790_v6 = vld [vmem:[#allocation2 + $0x1c] ss:$12 sps:$4 sm:$0xff]  }
  0x14   :  { %v1564_v3 = vld [vmem:[%s2245_s0] sm:$0xff]   ;;  %117 = vmatpush1.bf16.msra.mxu0 %v1563_v2  ;;  %v1571_v9 = vld [vmem:[%s2245_s0 + $0x8] sm:$0xff]   ;;  %v1805_v10 = vld [vmem:[#allocation2 + $0x30] ss:$12 sps:$4 sm:$0xff]   ;;  %v2254_v16 = vmov 0.0   ;;  %vm1728_vm1 = vmmov 0  }
  0x15   :  { %v1788_v5 = vld [vmem:[#allocation2] ss:$12 sps:$4 sm:$0xff]   ;;  %1387 = vmatprep.mubr.msk.bf16.mxu1 %vm103_vm0, %v1564_v3  ;;  %417 = vmatprep.subr.bf16.mxu0 %v1786_v4  ;;  %v1796_v7 = vld [vmem:[#allocation2 + $0x18] ss:$12 sps:$4 sm:$0xff]   ;;  %v1582_v11 = vld [vmem:[%s2247_s2 + $0x8] ss:$12 sps:$4 sm:$0xff]  }
  0x16   :  { %v1800_v8 = vld [vmem:[#allocation2 + $0x34] ss:$12 sps:$4 sm:$0xff]   ;;  %v1812_v12 = vld [vmem:[#allocation2 + $0x4c] ss:$12 sps:$4 sm:$0xff]   ;;  %1385 = vmatprep.subr.bf16.mxu1 %v1582_v11  ;;  %v1822_v15 = vld [vmem:[#allocation2 + $0x64] ss:$12 sps:$4 sm:$0xff]  }
  0x17   :  { %1259 = vmatmul.mubr.msk.bf16.vlgmr.msra.gmra.mrb[0].mxu0 %vm103_vm0, %v1564_v3  ;;  %v1815_v13 = vld [vmem:[#allocation2 + $0x48] ss:$12 sps:$4 sm:$0xff]   ;;  %1386 = vmatpush3.bf16.msra.mxu1 %v1582_v11  ;;  %v1830_v18 = vld [vmem:[#allocation2 + $0x20] ss:$12 sps:$4 sm:$0xff]   ;;  %v1840_v21 = vld [vmem:[#allocation2 + $0x78] ss:$12 sps:$4 sm:$0xff]  }
  0x18   :  { %418 = vmatpush1.bf16.msra.mxu0 %v1788_v5  ;;  %158 = vmatprep.mubr.bf16.mxu0 %v2252_v0  ;;  %v1578_v14 = vld [vmem:[%s2245_s0 + $0x10] sm:$0xff]   ;;  %v1834_v19 = vld [vmem:[#allocation2 + $0x60] ss:$12 sps:$4 sm:$0xff]   ;;  %v1838_v20 = vld [vmem:[#allocation2 + $0x7c] ss:$12 sps:$4 sm:$0xff]   ;;  %v53_v36 = vshrl.u32 %v52_v35, 7 }
  0x19   :  { %419 = vmatprep.subr.bf16.mxu0 %v1790_v6  ;;  %1395 = vmatprep.subr.bf16.mxu1 %v2254_v16  ;;  %v1826_v17 = vld [vmem:[#allocation2 + $0x8] ss:$12 sps:$4 sm:$0xff]   ;;  %v1844_v22 = vld [vmem:[#allocation2 + $0x38] ss:$12 sps:$4 sm:$0xff]   ;;  %v1857_v25 = vld [vmem:[#allocation2 + $0x50] ss:$12 sps:$4 sm:$0xff]  }
  0x1a   :  { %1388 = vmatmul.mubr.msk.bf16.vlgmr.msra.gmra.mrb[0].mxu1 %vm103_vm0, %v1571_v9  ;;  %v1586_v23 = vld [vmem:[%s2245_s0 + $0x18] sm:$0xff]   ;;  %v1852_v24 = vld [vmem:[#allocation2 + $0x94] ss:$12 sps:$4 sm:$0xff]   ;;  %v54_v37 = vsub.s32 0, %v53_v36  ;;  %v58_v39 = vsub.s32 1, %v53_v36  ;;  %v62_v48 = vsub.s32 2, %v53_v36 }
  0x1b   :  { %1396 = vmatpush3.bf16.msra.mxu1 %v1826_v17  ;;  %1391 = vmatprep.mubr.msk.bf16.mxu1 %vm103_vm0, %v1578_v14  ;;  %v1862_v26 = vld [vmem:[#allocation2 + $0x90] ss:$12 sps:$4 sm:$0xff]   ;;  %v1866_v27 = vld [vmem:[#allocation2 + $0xac] ss:$12 sps:$4 sm:$0xff]   ;;  %v1870_v28 = vld [vmem:[#allocation2 + $0x68] ss:$12 sps:$4 sm:$0xff]  }
  0x1c   :  { %420 = vmatpush1.bf16.msra.mxu0 %v1796_v7  ;;  %1397 = vmatprep.subr.bf16.mxu1 %v2254_v16  ;;  %v1873_v29 = vld [vmem:[#allocation2 + $0xa8] ss:$12 sps:$4 sm:$0xff]   ;;  %v1879_v30 = vld [vmem:[%s2246_s1] sm:$0xff]  ;;  %v1899_v34 = vld [vmem:[#allocation2 + $0xb0] ss:$12 sps:$4 sm:$0xff]  }
  0x1d   :  { %421 = vmatprep.subr.bf16.mxu0 %v1800_v8  ;;  %v288_v31 = vpack.c.bf16 %v1879_v30, %v1879_v30  ;;  %v1886_v32 = vld [vmem:[#allocation2 + $0x80] ss:$12 sps:$4 sm:$0xff]   ;;  %v1892_v33 = vld [vmem:[#allocation2 + $0x98] ss:$12 sps:$4 sm:$0xff]  }
  0x1e   :  { %v50_v38 = vld [vmem:[%s2249_s4] sm:$0x7] }
  0x1f   :  { %1260 = vmatmul.mubr.msk.bf16.gmra.mrb[4].mxu0 %vm103_vm0, %v1571_v9  ;;  %1398 = vmatpush3.bf16.msra.mxu1 %v1830_v18  ;;  %v55_v41 = vrot.slane %v50_v38, %v54_v37  ;;  %v59_v43 = vrot.slane %v50_v38, %v58_v39  ;;  %v63_v50 = vrot.slane %v50_v38, %v62_v48 }
  0x20   :  { %422 = vmatpush1.bf16.msra.mxu0 %v1805_v10  ;;  %168 = vmatprep.mubr.bf16.mxu0 %v2252_v0 }
  0x21   :  { %423 = vmatprep.subr.bf16.mxu0 %v1812_v12  ;;  %1399 = vmatprep.subr.bf16.mxu1 %v2254_v16 }
  0x22   :  { %1392 = vmatmul.mubr.msk.bf16.gmra.mrb[4].mxu1 %vm103_vm0, %v1586_v23 }
  0x23   :  { %1400 = vmatpush3.bf16.msra.mxu1 %v1844_v22  ;;  %1411 = vmatprep.mubr.msk.bf16.mxu1 %vm1728_vm1, %v2254_v16 }
  0x24   :  { %424 = vmatpush1.bf16.msra.mxu0 %v1815_v13  ;;  %1401 = vmatprep.subr.bf16.mxu1 %v2254_v16 }
  0x25   :  { %425 = vmatprep.subr.bf16.mxu0 %v1822_v15 }
  0x27   :  { %1261 = vmatmul.mubr.msk.bf16.gmra.mrb[8].mxu0 %vm103_vm0, %v1578_v14  ;;  %1402 = vmatpush3.bf16.msra.mxu1 %v1857_v25 }
  0x28   :  { %426 = vmatpush1.bf16.msra.mxu0 %v1834_v19  ;;  %178 = vmatprep.mubr.bf16.mxu0 %v2252_v0 }
  0x29   :  { %427 = vmatprep.subr.bf16.mxu0 %v1838_v20  ;;  %1403 = vmatprep.subr.bf16.mxu1 %v2254_v16 }
  0x2b   :  { %1404 = vmatpush3.bf16.msra.mxu1 %v1870_v28 }
  0x2c   :  { %428 = vmatpush1.bf16.msra.mxu0 %v1840_v21  ;;  %1405 = vmatprep.subr.bf16.mxu1 %v2254_v16 }
  0x2d   :  { %429 = vmatprep.subr.bf16.mxu0 %v1852_v24 }
  0x2f   :  { %1262 = vmatmul.mubr.msk.bf16.gmra.mrb[12].mxu0 %vm103_vm0, %v1586_v23  ;;  %1406 = vmatpush3.bf16.msra.mxu1 %v1886_v32 }
  0x30   :  { %430 = vmatpush1.bf16.msra.mxu0 %v1862_v26  ;;  %449 = vmatprep.mubr.bf16.mxu0 %v2252_v0 }
  0x31   :  { %431 = vmatprep.subr.bf16.mxu0 %v1866_v27  ;;  %1407 = vmatprep.subr.bf16.mxu1 %v2254_v16 }
  0x33   :  { %1408 = vmatpush3.bf16.msra.mxu1 %v1892_v33 }
  0x34   :  { %432 = vmatpush1.bf16.msra.mxu0 %v1873_v29  ;;  %1409 = vmatprep.subr.bf16.mxu1 %v2254_v16 }
  0x35   :  { %526 = vmatprep.subr.bf16.mxu0 %v1786_v4 }
  0x37   :  { %450 = vmatmul.mubr.bf16.vlgmr.msra.gmra.mrb[16].mxu0 %v288_v31  ;;  %1410 = vmatpush3.bf16.msra.mxu1 %v1899_v34 }
  0x38   :  { %527 = vmatpush1.bf16.msra.mxu0 %v1788_v5  ;;  %558 = vmatprep.mubr.bf16.mxu0 %v2252_v0 }
  0x39   :  { %528 = vmatprep.subr.bf16.mxu0 %v1790_v6  ;;  %1415 = vmatprep.subr.bf16.mxu1 %v2254_v16 }
  0x3a   :  { %1412 = vmatmul.mubr.bf16.vlgmr.msra.gmra.mrb[8].mxu1 %v288_v31 }
  0x3b   :  { %1416 = vmatpush3.bf16.msra.mxu1 %v1826_v17  ;;  %1431 = vmatprep.mubr.msk.bf16.mxu1 %vm1728_vm1, %v2254_v16 }
  0x3c   :  { %529 = vmatpush1.bf16.msra.mxu0 %v1796_v7  ;;  %1417 = vmatprep.subr.bf16.mxu1 %v2254_v16 }
  0x3d   :  { %530 = vmatprep.subr.bf16.mxu0 %v1800_v8 }
  0x3f   :  { %1418 = vmatpush3.bf16.msra.mxu1 %v1830_v18 }
  0x40   :  { %531 = vmatpush1.bf16.msra.mxu0 %v1805_v10  ;;  %1419 = vmatprep.subr.bf16.mxu1 %v2254_v16 }
  0x41   :  { %532 = vmatprep.subr.bf16.mxu0 %v1812_v12 }
  0x43   :  { %1420 = vmatpush3.bf16.msra.mxu1 %v1844_v22 }
  0x44   :  { %533 = vmatpush1.bf16.msra.mxu0 %v1815_v13  ;;  %1421 = vmatprep.subr.bf16.mxu1 %v2254_v16 }
  0x45   :  { %534 = vmatprep.subr.bf16.mxu0 %v1822_v15 }
  0x47   :  { %1422 = vmatpush3.bf16.msra.mxu1 %v1857_v25 }
  0x48   :  { %535 = vmatpush1.bf16.msra.mxu0 %v1834_v19  ;;  %1423 = vmatprep.subr.bf16.mxu1 %v2254_v16 }
  0x49   :  { %536 = vmatprep.subr.bf16.mxu0 %v1838_v20 }
  0x4b   :  { %1424 = vmatpush3.bf16.msra.mxu1 %v1870_v28 }
  0x4c   :  { %537 = vmatpush1.bf16.msra.mxu0 %v1840_v21  ;;  %1425 = vmatprep.subr.bf16.mxu1 %v2254_v16 }
  0x4d   :  { %538 = vmatprep.subr.bf16.mxu0 %v1852_v24 }
  0x4f   :  { %1426 = vmatpush3.bf16.msra.mxu1 %v1886_v32 }
  0x50   :  { %539 = vmatpush1.bf16.msra.mxu0 %v1862_v26  ;;  %1427 = vmatprep.subr.bf16.mxu1 %v2254_v16 }
  0x51   :  { %540 = vmatprep.subr.bf16.mxu0 %v1866_v27 }
  0x53   :  { %1428 = vmatpush3.bf16.msra.mxu1 %v1892_v33 }
  0x54   :  { %541 = vmatpush1.bf16.msra.mxu0 %v1873_v29  ;;  %1429 = vmatprep.subr.bf16.mxu1 %v2254_v16 }
  0x55   :  { %629 = vmatprep.subr.bf16.mxu0 %v1786_v4 }
  0x57   :  { %1430 = vmatpush3.bf16.msra.mxu1 %v1899_v34 }
  0x58   :  { %1435 = vmatprep.subr.bf16.mxu1 %v2254_v16 }
  0xea   :  { %v150_v40 = vpop.f32.mrb[0].mxu0 }
  0xeb   :  { %v152_v42 = vpop.f32.mrb[1].mxu0 }
  0xec   :  { %v154_v44 = vpop.f32.mrb[2].mxu0 }
  0xed   :  { %v1939_v45 = vadd.f32 %v154_v44, %v55_v41  ;;  %v156_v46 = vpop.f32.mrb[3].mxu0  ;;  %v1389_v57 = vpop.f32.mrb[0].mxu1 }
  0xee   :  { %v1941_v47 = vadd.f32 %v156_v46, %v59_v43  ;;  %v1951_v59 = vadd.f32 %v1389_v57, %v63_v50  ;;  %v223_v60 = vpop.f32.mrb[1].mxu1 }
  0xef   :  { %v1390_v61 = vpop.f32.mrb[2].mxu1 }
  0xf0   :  { %v1953_v62 = vadd.f32 %v1390_v61, %v63_v50  ;;  %v226_v63 = vpop.f32.mrb[3].mxu1 }
  0xf1   :  { %v1955_v1 = vadd.f32 %v226_v63, %v63_v50 }
  0xf2   :  { %v160_v49 = vpop.f32.mrb[4].mxu0 }
  0xf3   :  { %v1943_v51 = vadd.f32 %v160_v49, %v55_v41  ;;  %v162_v52 = vpop.f32.mrb[5].mxu0 }
  0xf4   :  { %v1945_v53 = vadd.f32 %v162_v52, %v59_v43  ;;  %v164_v54 = vpop.f32.mrb[6].mxu0 }
  0xf5   :  { %v1947_v55 = vadd.f32 %v164_v54, %v55_v41  ;;  %v166_v56 = vpop.f32.mrb[7].mxu0  ;;  %v1393_v35 = vpop.f32.mrb[4].mxu1 }
  0xf6   :  { %v1949_v58 = vadd.f32 %v166_v56, %v59_v43  ;;  %v1965_v37 = vadd.f32 %v1393_v35, %v63_v50  ;;  %v239_v38 = vpop.f32.mrb[5].mxu1 }
  0xf7   :  { %v1967_v39 = vadd.f32 %v239_v38, %v63_v50  ;;  %v1394_v44 = vpop.f32.mrb[6].mxu1 }
  0xf8   :  { %2256 = vst [vmem:[#allocation5_spill] sm:$0xff] %v1965_v37  ;;  %v1969_v46 = vadd.f32 %v1394_v44, %v63_v50  ;;  %v242_v48 = vpop.f32.mrb[7].mxu1 }
  0xf9   :  { %v1971_v49 = vadd.f32 %v242_v48, %v63_v50 }
  0xfa   :  { %v170_v2 = vpop.f32.mrb[8].mxu0  ;;  %2257 = vst [vmem:[#allocation6_spill] sm:$0xff] %v1969_v46 }
  0xfb   :  { %v1957_v3 = vadd.f32 %v170_v2, %v55_v41  ;;  %v172_v9 = vpop.f32.mrb[9].mxu0 }
  0xfc   :  { %v1959_v11 = vadd.f32 %v172_v9, %v59_v43  ;;  %v174_v14 = vpop.f32.mrb[10].mxu0 }
  0xfd   :  { %v1961_v23 = vadd.f32 %v174_v14, %v55_v41  ;;  %v176_v31 = vpop.f32.mrb[11].mxu0  ;;  %v151_v14 = vadd.f32 %v150_v40, %v55_v41  ;;  %v1984_v40 = vld [vmem:[%s2250_s5] ss:$0 sm:$0xff] }
  0xfe   :  { %v1963_v36 = vadd.f32 %v176_v31, %v59_v43  ;;  %v153_v31 = vadd.f32 %v152_v42, %v59_v43 }
 0x102   :  { %v180_v52 = vpop.f32.mrb[12].mxu0 }
 0x103   :  { %v1973_v54 = vadd.f32 %v180_v52, %v55_v41  ;;  %v182_v56 = vpop.f32.mrb[13].mxu0 }
 0x104   :  { %v1975_v57 = vadd.f32 %v182_v56, %v59_v43  ;;  %v184_v61 = vpop.f32.mrb[14].mxu0 }
 0x105   :  { %2258 = vst [vmem:[#allocation7_spill] sm:$0xff] %v1973_v54  ;;  %v1977_v63 = vadd.f32 %v184_v61, %v55_v41  ;;  %v186_v2 = vpop.f32.mrb[15].mxu0 }
 0x106   :  { %2259 = vst [vmem:[#allocation8_spill] sm:$0xff] %v1975_v57  ;;  %v1979_v9 = vadd.f32 %v186_v2, %v59_v43 }
 0x107   :  { %2260 = vst [vmem:[#allocation9_spill] sm:$0xff] %v1977_v63 }
 0x10a   :  { %v451_v35 = vpop.f32.mrb[16].mxu0 }
 0x10b   :  { %v498_v38 = vadd.f32 %v451_v35, %v151_v14  ;;  %v453_v44 = vpop.f32.mrb[17].mxu0 }
 0x10c   :  { %v505_v0 = vadd.f32 %v453_v44, %v153_v31  ;;  %v455_v48 = vpop.f32.mrb[18].mxu0 }
 0x10d   :  { %v1291_v16 = vmul.f32 -1.442695, %v498_v38  ;;  %v456_v46 = vpop.f32.mrb[19].mxu0  ;;  %v492_v52 = vpop.f32.mrb[8].mxu1 }
 0x10e   :  { %v1413_v37 = vpop.f32.mrb[9].mxu1  ;;  %v1292_v56 = vmul.f32 -1.442695, %v505_v0  ;;  %v518_v41 = vadd.f32 %v1984_v40, %v492_v52  ;;  %v224_v46 = vadd.f32 %v223_v60, %v63_v50  ;;  %v2261_v50 = vmov 0.0  }
 0x10f   :  { %1601 = vpow2.f32 %v1291_v16  ;;  %v495_v57 = vpop.f32.mrb[10].mxu1  ;;  %v2262_v60 = vmov 0  }
 0x110   :  { %v1414_v54 = vpop.f32.mrb[11].mxu1  ;;  %1603 = vpow2.f32 %v1292_v56 }
 0x119   :  { %v1602_v61 = vpop.eup %1601 }
 0x11a   :  { %v502_v63 = vadd.f32 1.0, %v1602_v61  ;;  %v1604_v42 = vpop.eup %1603 }
 0x11b   :  { %v509_v2 = vadd.f32 1.0, %v1604_v42 }
 0x11c   :  { %1605 = vrcp.f32 %v502_v63 }
 0x126   :  { %v1606_v43 = vpop.eup %1605 }
 0x127   :  { %v519_v16 = vmul.f32 %v1606_v43, %v518_v41 }
 0x129   :  { %v520_v37 = vadd.f32 %v519_v16, %v224_v46 }
 0x12b   :  { %1607 = vtanh.f32 %v520_v37 }
 0x12c   :  { %1609 = vrcp.f32 %v509_v2 }
 0x135   :  { %v1608_v0 = vpop.eup %1607 }
 0x136   :  { %v522_v54 = vsub.f32 %v1879_v30, %v1608_v0  ;;  %v1610_v57 = vpop.eup %1609 }
 0x138   :  { %v523_v63 = vmul.f32 %v1610_v57, %v522_v54 }
 0x13a   :  { %v1988_v14 = vadd.f32 %v1608_v0, %v523_v63 }
 0x13c   :  { %v525_v31 = vpack.c.bf16 %v1988_v14, %v1988_v14 }
 0x13e   :  { %559 = vmatmul.mubr.bf16.vlgmr.msra.gmra.mrb[20].mxu0 %v525_v31  ;;  %1432 = vmatmul.mubr.bf16.vlgmr.msra.gmra.mrb[12].mxu1 %v525_v31 }
 0x13f   :  { %630 = vmatpush1.bf16.msra.mxu0 %v1788_v5  ;;  %1436 = vmatpush3.bf16.msra.mxu1 %v1826_v17 }
 0x140   :  { %631 = vmatprep.subr.bf16.mxu0 %v1790_v6  ;;  %1437 = vmatprep.subr.bf16.mxu1 %v2261_v50 }
 0x141   :  { %661 = vmatprep.mubr.bf16.mxu0 %v2262_v60  ;;  %1451 = vmatprep.mubr.msk.bf16.mxu1 %vm1728_vm1, %v2261_v50 }
 0x143   :  { %632 = vmatpush1.bf16.msra.mxu0 %v1796_v7  ;;  %1438 = vmatpush3.bf16.msra.mxu1 %v1830_v18 }
 0x144   :  { %633 = vmatprep.subr.bf16.mxu0 %v1800_v8  ;;  %1439 = vmatprep.subr.bf16.mxu1 %v2261_v50 }
 0x147   :  { %634 = vmatpush1.bf16.msra.mxu0 %v1805_v10  ;;  %1440 = vmatpush3.bf16.msra.mxu1 %v1844_v22 }
 0x148   :  { %635 = vmatprep.subr.bf16.mxu0 %v1812_v12  ;;  %1441 = vmatprep.subr.bf16.mxu1 %v2261_v50 }
 0x14b   :  { %636 = vmatpush1.bf16.msra.mxu0 %v1815_v13  ;;  %1442 = vmatpush3.bf16.msra.mxu1 %v1857_v25 }
 0x14c   :  { %637 = vmatprep.subr.bf16.mxu0 %v1822_v15  ;;  %1443 = vmatprep.subr.bf16.mxu1 %v2261_v50 }
 0x14f   :  { %638 = vmatpush1.bf16.msra.mxu0 %v1834_v19  ;;  %1444 = vmatpush3.bf16.msra.mxu1 %v1870_v28 }
 0x150   :  { %639 = vmatprep.subr.bf16.mxu0 %v1838_v20  ;;  %1445 = vmatprep.subr.bf16.mxu1 %v2261_v50 }
 0x153   :  { %640 = vmatpush1.bf16.msra.mxu0 %v1840_v21  ;;  %1446 = vmatpush3.bf16.msra.mxu1 %v1886_v32 }
 0x154   :  { %641 = vmatprep.subr.bf16.mxu0 %v1852_v24  ;;  %1447 = vmatprep.subr.bf16.mxu1 %v2261_v50 }
 0x157   :  { %642 = vmatpush1.bf16.msra.mxu0 %v1862_v26  ;;  %1448 = vmatpush3.bf16.msra.mxu1 %v1892_v33 }
 0x158   :  { %643 = vmatprep.subr.bf16.mxu0 %v1866_v27  ;;  %1449 = vmatprep.subr.bf16.mxu1 %v2261_v50 }
 0x15b   :  { %644 = vmatpush1.bf16.msra.mxu0 %v1873_v29  ;;  %1450 = vmatpush3.bf16.msra.mxu1 %v1899_v34 }
 0x15c   :  { %732 = vmatprep.subr.bf16.mxu0 %v1786_v4  ;;  %1455 = vmatprep.subr.bf16.mxu1 %v2261_v50 }
 0x211   :  { %v560_v30 = vpop.f32.mrb[20].mxu0  ;;  %v601_v35 = vpop.f32.mrb[12].mxu1 }
 0x212   :  { %v607_v38 = vadd.f32 %v560_v30, %v1939_v45  ;;  %v562_v44 = vpop.f32.mrb[21].mxu0  ;;  %v1433_v48 = vpop.f32.mrb[13].mxu1  ;;  %v621_v0 = vadd.f32 %v1984_v40, %v601_v35 }
 0x213   :  { %v614_v52 = vadd.f32 %v562_v44, %v1941_v47  ;;  %v564_v56 = vpop.f32.mrb[22].mxu0  ;;  %v604_v61 = vpop.f32.mrb[14].mxu1 }
 0x214   :  { %v1294_v41 = vmul.f32 -1.442695, %v607_v38  ;;  %v565_v42 = vpop.f32.mrb[23].mxu0  ;;  %v1434_v43 = vpop.f32.mrb[15].mxu1 }
 0x215   :  { %v1295_v46 = vmul.f32 -1.442695, %v614_v52 }
 0x216   :  { %1611 = vpow2.f32 %v1294_v41 }
 0x217   :  { %1613 = vpow2.f32 %v1295_v46 }
 0x220   :  { %v1612_v16 = vpop.eup %1611 }
 0x221   :  { %v611_v2 = vadd.f32 1.0, %v1612_v16  ;;  %v1614_v37 = vpop.eup %1613 }
 0x222   :  { %v618_v63 = vadd.f32 1.0, %v1614_v37 }
 0x223   :  { %1615 = vrcp.f32 %v611_v2 }
 0x22d   :  { %v1616_v54 = vpop.eup %1615 }
 0x22e   :  { %v622_v45 = vmul.f32 %v1616_v54, %v621_v0 }
 0x230   :  { %v623_v57 = vadd.f32 %v622_v45, %v1955_v1 }
 0x232   :  { %1617 = vtanh.f32 %v623_v57 }
 0x233   :  { %1619 = vrcp.f32 %v618_v63 }
 0x23c   :  { %v1618_v47 = vpop.eup %1617 }
 0x23d   :  { %v625_v31 = vsub.f32 %v1988_v14, %v1618_v47  ;;  %v1620_v30 = vpop.eup %1619 }
 0x23f   :  { %v626_v38 = vmul.f32 %v1620_v30, %v625_v31 }
 0x241   :  { %v2032_v44 = vadd.f32 %v1618_v47, %v626_v38 }
 0x243   :  { %v628_v48 = vpack.c.bf16 %v2032_v44, %v2032_v44 }
 0x245   :  { %662 = vmatmul.mubr.bf16.vlgmr.msra.gmra.mrb[24].mxu0 %v628_v48  ;;  %1452 = vmatmul.mubr.bf16.vlgmr.msra.gmra.mrb[16].mxu1 %v628_v48 }
 0x246   :  { %733 = vmatpush1.bf16.msra.mxu0 %v1788_v5  ;;  %1456 = vmatpush3.bf16.msra.mxu1 %v1826_v17 }
 0x247   :  { %734 = vmatprep.subr.bf16.mxu0 %v1790_v6  ;;  %1457 = vmatprep.subr.bf16.mxu1 %v2261_v50 }
 0x248   :  { %764 = vmatprep.mubr.bf16.mxu0 %v2262_v60  ;;  %1471 = vmatprep.mubr.msk.bf16.mxu1 %vm1728_vm1, %v2261_v50 }
 0x24a   :  { %735 = vmatpush1.bf16.msra.mxu0 %v1796_v7  ;;  %1458 = vmatpush3.bf16.msra.mxu1 %v1830_v18 }
 0x24b   :  { %736 = vmatprep.subr.bf16.mxu0 %v1800_v8  ;;  %1459 = vmatprep.subr.bf16.mxu1 %v2261_v50 }
 0x24e   :  { %737 = vmatpush1.bf16.msra.mxu0 %v1805_v10  ;;  %1460 = vmatpush3.bf16.msra.mxu1 %v1844_v22 }
 0x24f   :  { %738 = vmatprep.subr.bf16.mxu0 %v1812_v12  ;;  %1461 = vmatprep.subr.bf16.mxu1 %v2261_v50 }
 0x252   :  { %739 = vmatpush1.bf16.msra.mxu0 %v1815_v13  ;;  %1462 = vmatpush3.bf16.msra.mxu1 %v1857_v25 }
 0x253   :  { %740 = vmatprep.subr.bf16.mxu0 %v1822_v15  ;;  %1463 = vmatprep.subr.bf16.mxu1 %v2261_v50 }
 0x256   :  { %741 = vmatpush1.bf16.msra.mxu0 %v1834_v19  ;;  %1464 = vmatpush3.bf16.msra.mxu1 %v1870_v28 }
 0x257   :  { %742 = vmatprep.subr.bf16.mxu0 %v1838_v20  ;;  %1465 = vmatprep.subr.bf16.mxu1 %v2261_v50 }
 0x25a   :  { %743 = vmatpush1.bf16.msra.mxu0 %v1840_v21  ;;  %1466 = vmatpush3.bf16.msra.mxu1 %v1886_v32 }
 0x25b   :  { %744 = vmatprep.subr.bf16.mxu0 %v1852_v24  ;;  %1467 = vmatprep.subr.bf16.mxu1 %v2261_v50 }
 0x25e   :  { %745 = vmatpush1.bf16.msra.mxu0 %v1862_v26  ;;  %1468 = vmatpush3.bf16.msra.mxu1 %v1892_v33 }
 0x25f   :  { %746 = vmatprep.subr.bf16.mxu0 %v1866_v27  ;;  %1469 = vmatprep.subr.bf16.mxu1 %v2261_v50 }
 0x262   :  { %747 = vmatpush1.bf16.msra.mxu0 %v1873_v29  ;;  %1470 = vmatpush3.bf16.msra.mxu1 %v1899_v34 }
 0x263   :  { %835 = vmatprep.subr.bf16.mxu0 %v1786_v4  ;;  %1475 = vmatprep.subr.bf16.mxu1 %v2261_v50 }
 0x318   :  { %v663_v1 = vpop.f32.mrb[24].mxu0  ;;  %v704_v14 = vpop.f32.mrb[16].mxu1 }
 0x319   :  { %v710_v35 = vadd.f32 %v663_v1, %v1943_v51  ;;  %v665_v52 = vpop.f32.mrb[25].mxu0  ;;  %v1453_v56 = vpop.f32.mrb[17].mxu1  ;;  %v724_v45 = vadd.f32 %v1984_v40, %v704_v14 }
 0x31a   :  { %v717_v61 = vadd.f32 %v665_v52, %v1945_v53  ;;  %v667_v41 = vpop.f32.mrb[26].mxu0  ;;  %v707_v42 = vpop.f32.mrb[18].mxu1 }
 0x31b   :  { %v1296_v43 = vmul.f32 -1.442695, %v710_v35  ;;  %v668_v46 = vpop.f32.mrb[27].mxu0  ;;  %v1454_v16 = vpop.f32.mrb[19].mxu1 }
 0x31c   :  { %v1297_v2 = vmul.f32 -1.442695, %v717_v61 }
 0x31d   :  { %1621 = vpow2.f32 %v1296_v43 }
 0x31e   :  { %1623 = vpow2.f32 %v1297_v2 }
 0x327   :  { %v1622_v37 = vpop.eup %1621 }
 0x328   :  { %v714_v0 = vadd.f32 1.0, %v1622_v37  ;;  %v1624_v54 = vpop.eup %1623 }
 0x329   :  { %v721_v47 = vadd.f32 1.0, %v1624_v54 }
 0x32a   :  { %1625 = vrcp.f32 %v714_v0 }
 0x334   :  { %v1626_v57 = vpop.eup %1625 }
 0x335   :  { %v725_v51 = vmul.f32 %v1626_v57, %v724_v45 }
 0x337   :  { %v726_v63 = vadd.f32 %v725_v51, %v1951_v59 }
 0x339   :  { %1627 = vtanh.f32 %v726_v63 }
 0x33a   :  { %1629 = vrcp.f32 %v721_v47 }
 0x343   :  { %v1628_v53 = vpop.eup %1627 }
 0x344   :  { %v728_v31 = vsub.f32 %v2032_v44, %v1628_v53  ;;  %v1630_v30 = vpop.eup %1629 }
 0x346   :  { %v729_v38 = vmul.f32 %v1630_v30, %v728_v31 }
 0x348   :  { %v2076_v48 = vadd.f32 %v1628_v53, %v729_v38 }
 0x34a   :  { %v731_v1 = vpack.c.bf16 %v2076_v48, %v2076_v48 }
 0x34c   :  { %765 = vmatmul.mubr.bf16.vlgmr.msra.gmra.mrb[28].mxu0 %v731_v1  ;;  %1472 = vmatmul.mubr.bf16.vlgmr.msra.gmra.mrb[20].mxu1 %v731_v1 }
 0x34d   :  { %836 = vmatpush1.bf16.msra.mxu0 %v1788_v5  ;;  %1476 = vmatpush3.bf16.msra.mxu1 %v1826_v17 }
 0x34e   :  { %837 = vmatprep.subr.bf16.mxu0 %v1790_v6  ;;  %1477 = vmatprep.subr.bf16.mxu1 %v2261_v50 }
 0x34f   :  { %867 = vmatprep.mubr.bf16.mxu0 %v2262_v60  ;;  %1491 = vmatprep.mubr.msk.bf16.mxu1 %vm1728_vm1, %v2261_v50 }
 0x351   :  { %838 = vmatpush1.bf16.msra.mxu0 %v1796_v7  ;;  %1478 = vmatpush3.bf16.msra.mxu1 %v1830_v18 }
 0x352   :  { %839 = vmatprep.subr.bf16.mxu0 %v1800_v8  ;;  %1479 = vmatprep.subr.bf16.mxu1 %v2261_v50 }
 0x355   :  { %840 = vmatpush1.bf16.msra.mxu0 %v1805_v10  ;;  %1480 = vmatpush3.bf16.msra.mxu1 %v1844_v22 }
 0x356   :  { %841 = vmatprep.subr.bf16.mxu0 %v1812_v12  ;;  %1481 = vmatprep.subr.bf16.mxu1 %v2261_v50 }
 0x359   :  { %842 = vmatpush1.bf16.msra.mxu0 %v1815_v13  ;;  %1482 = vmatpush3.bf16.msra.mxu1 %v1857_v25 }
 0x35a   :  { %843 = vmatprep.subr.bf16.mxu0 %v1822_v15  ;;  %1483 = vmatprep.subr.bf16.mxu1 %v2261_v50 }
 0x35d   :  { %844 = vmatpush1.bf16.msra.mxu0 %v1834_v19  ;;  %1484 = vmatpush3.bf16.msra.mxu1 %v1870_v28 }
 0x35e   :  { %845 = vmatprep.subr.bf16.mxu0 %v1838_v20  ;;  %1485 = vmatprep.subr.bf16.mxu1 %v2261_v50 }
 0x361   :  { %846 = vmatpush1.bf16.msra.mxu0 %v1840_v21  ;;  %1486 = vmatpush3.bf16.msra.mxu1 %v1886_v32 }
 0x362   :  { %847 = vmatprep.subr.bf16.mxu0 %v1852_v24  ;;  %1487 = vmatprep.subr.bf16.mxu1 %v2261_v50 }
 0x365   :  { %848 = vmatpush1.bf16.msra.mxu0 %v1862_v26  ;;  %1488 = vmatpush3.bf16.msra.mxu1 %v1892_v33 }
 0x366   :  { %849 = vmatprep.subr.bf16.mxu0 %v1866_v27  ;;  %1489 = vmatprep.subr.bf16.mxu1 %v2261_v50 }
 0x369   :  { %850 = vmatpush1.bf16.msra.mxu0 %v1873_v29  ;;  %1490 = vmatpush3.bf16.msra.mxu1 %v1899_v34 }
 0x36a   :  { %938 = vmatprep.subr.bf16.mxu0 %v1786_v4  ;;  %1495 = vmatprep.subr.bf16.mxu1 %v2261_v50 }
 0x41f   :  { %v766_v59 = vpop.f32.mrb[28].mxu0  ;;  %v807_v44 = vpop.f32.mrb[20].mxu1 }
 0x420   :  { %v813_v14 = vadd.f32 %v766_v59, %v1947_v55  ;;  %v768_v35 = vpop.f32.mrb[29].mxu0  ;;  %v1473_v52 = vpop.f32.mrb[21].mxu1  ;;  %v827_v54 = vadd.f32 %v1984_v40, %v807_v44 }
 0x421   :  { %v820_v56 = vadd.f32 %v768_v35, %v1949_v58  ;;  %v770_v61 = vpop.f32.mrb[30].mxu0  ;;  %v810_v41 = vpop.f32.mrb[22].mxu1 }
 0x422   :  { %v1298_v42 = vmul.f32 -1.442695, %v813_v14  ;;  %v771_v43 = vpop.f32.mrb[31].mxu0  ;;  %v1474_v46 = vpop.f32.mrb[23].mxu1 }
 0x423   :  { %v1299_v16 = vmul.f32 -1.442695, %v820_v56 }
 0x424   :  { %1631 = vpow2.f32 %v1298_v42 }
 0x425   :  { %1633 = vpow2.f32 %v1299_v16 }
 0x42e   :  { %v1632_v2 = vpop.eup %1631 }
 0x42f   :  { %v817_v37 = vadd.f32 1.0, %v1632_v2  ;;  %v1634_v0 = vpop.eup %1633 }
 0x430   :  { %v824_v51 = vadd.f32 1.0, %v1634_v0 }
 0x431   :  { %1635 = vrcp.f32 %v817_v37 }
 0x43b   :  { %v1636_v45 = vpop.eup %1635 }
 0x43c   :  { %v828_v55 = vmul.f32 %v1636_v45, %v827_v54 }
 0x43e   :  { %v829_v57 = vadd.f32 %v828_v55, %v1953_v62  ;;  %v2168_v55 = vld [vmem:[#allocation2] ss:$12 sps:$4 sm:$0xff]  }
 0x440   :  { %1637 = vtanh.f32 %v829_v57 }
 0x441   :  { %1639 = vrcp.f32 %v824_v51 }
 0x44a   :  { %v1638_v58 = vpop.eup %1637 }
 0x44b   :  { %v831_v63 = vsub.f32 %v2076_v48, %v1638_v58  ;;  %v1640_v47 = vpop.eup %1639 }
 0x44d   :  { %v832_v53 = vmul.f32 %v1640_v47, %v831_v63 }
 0x44f   :  { %v2120_v31 = vadd.f32 %v1638_v58, %v832_v53 }
 0x451   :  { %v834_v30 = vpack.c.bf16 %v2120_v31, %v2120_v31 }
 0x453   :  { %868 = vmatmul.mubr.bf16.vlgmr.msra.gmra.mrb[32].mxu0 %v834_v30  ;;  %1492 = vmatmul.mubr.bf16.vlgmr.msra.gmra.mrb[24].mxu1 %v834_v30 }
 0x454   :  { %939 = vmatpush1.bf16.msra.mxu0 %v1788_v5  ;;  %1496 = vmatpush3.bf16.msra.mxu1 %v1826_v17 }
 0x455   :  { %940 = vmatprep.subr.bf16.mxu0 %v1790_v6  ;;  %1497 = vmatprep.subr.bf16.mxu1 %v2261_v50 }
 0x456   :  { %970 = vmatprep.mubr.bf16.mxu0 %v2262_v60  ;;  %1511 = vmatprep.mubr.msk.bf16.mxu1 %vm1728_vm1, %v2261_v50 }
 0x458   :  { %941 = vmatpush1.bf16.msra.mxu0 %v1796_v7  ;;  %1498 = vmatpush3.bf16.msra.mxu1 %v1830_v18 }
 0x459   :  { %942 = vmatprep.subr.bf16.mxu0 %v1800_v8  ;;  %1499 = vmatprep.subr.bf16.mxu1 %v2261_v50 }
 0x45c   :  { %943 = vmatpush1.bf16.msra.mxu0 %v1805_v10  ;;  %1500 = vmatpush3.bf16.msra.mxu1 %v1844_v22 }
 0x45d   :  { %944 = vmatprep.subr.bf16.mxu0 %v1812_v12  ;;  %1501 = vmatprep.subr.bf16.mxu1 %v2261_v50 }
 0x460   :  { %945 = vmatpush1.bf16.msra.mxu0 %v1815_v13  ;;  %1502 = vmatpush3.bf16.msra.mxu1 %v1857_v25 }
 0x461   :  { %946 = vmatprep.subr.bf16.mxu0 %v1822_v15  ;;  %1503 = vmatprep.subr.bf16.mxu1 %v2261_v50 }
 0x464   :  { %947 = vmatpush1.bf16.msra.mxu0 %v1834_v19  ;;  %1504 = vmatpush3.bf16.msra.mxu1 %v1870_v28 }
 0x465   :  { %948 = vmatprep.subr.bf16.mxu0 %v1838_v20  ;;  %1505 = vmatprep.subr.bf16.mxu1 %v2261_v50 }
 0x468   :  { %949 = vmatpush1.bf16.msra.mxu0 %v1840_v21  ;;  %1506 = vmatpush3.bf16.msra.mxu1 %v1886_v32 }
 0x469   :  { %950 = vmatprep.subr.bf16.mxu0 %v1852_v24  ;;  %1507 = vmatprep.subr.bf16.mxu1 %v2261_v50 }
 0x46c   :  { %951 = vmatpush1.bf16.msra.mxu0 %v1862_v26  ;;  %1508 = vmatpush3.bf16.msra.mxu1 %v1892_v33 }
 0x46d   :  { %952 = vmatprep.subr.bf16.mxu0 %v1866_v27  ;;  %1509 = vmatprep.subr.bf16.mxu1 %v2261_v50 }
 0x470   :  { %953 = vmatpush1.bf16.msra.mxu0 %v1873_v29  ;;  %1510 = vmatpush3.bf16.msra.mxu1 %v1899_v34 }
 0x471   :  { %1041 = vmatprep.subr.bf16.mxu0 %v1786_v4  ;;  %1515 = vmatprep.subr.bf16.mxu1 %v2261_v50 }
 0x526   :  { %v869_v5 = vpop.f32.mrb[32].mxu0  ;;  %v910_v6 = vpop.f32.mrb[24].mxu1 }
 0x527   :  { %v916_v62 = vadd.f32 %v869_v5, %v1957_v3  ;;  %v871_v38 = vpop.f32.mrb[33].mxu0  ;;  %v1493_v48 = vpop.f32.mrb[25].mxu1  ;;  %v930_v42 = vadd.f32 %v1984_v40, %v910_v6 }
 0x528   :  { %v923_v1 = vadd.f32 %v871_v38, %v1959_v11  ;;  %v873_v59 = vpop.f32.mrb[34].mxu0  ;;  %v913_v44 = vpop.f32.mrb[26].mxu1  ;;  %v1686_v38 = vld [vmem:[#allocation2 + $0x20] ss:$12 sps:$4 sm:$0xff]  }
 0x529   :  { %v1300_v14 = vmul.f32 -1.442695, %v916_v62  ;;  %v874_v35 = vpop.f32.mrb[35].mxu0  ;;  %v1494_v52 = vpop.f32.mrb[27].mxu1  ;;  %v1684_v62 = vld [vmem:[#allocation2 + $0x8] ss:$12 sps:$4 sm:$0xff]  }
 0x52a   :  { %v1301_v56 = vmul.f32 -1.442695, %v923_v1  ;;  %v1687_v48 = vld [vmem:[#allocation2 + $0x34] ss:$12 sps:$4 sm:$0xff]   ;;  %v1688_v1 = vld [vmem:[#allocation2 + $0x30] ss:$12 sps:$4 sm:$0xff]  }
 0x52b   :  { %1641 = vpow2.f32 %v1300_v14  ;;  %v1689_v59 = vld [vmem:[#allocation2 + $0x38] ss:$12 sps:$4 sm:$0xff]   ;;  %v1693_v35 = vld [vmem:[#allocation2 + $0x60] ss:$12 sps:$4 sm:$0xff]   ;;  %v1694_v52 = vld [vmem:[#allocation2 + $0x7c] ss:$12 sps:$4 sm:$0xff]  }
 0x52c   :  { %1643 = vpow2.f32 %v1301_v56  ;;  %v1690_v44 = vld [vmem:[#allocation2 + $0x4c] ss:$12 sps:$4 sm:$0xff]   ;;  %v1692_v14 = vld [vmem:[#allocation2 + $0x64] ss:$12 sps:$4 sm:$0xff]  }
 0x52d   :  { %v1695_v56 = vld [vmem:[#allocation2 + $0x78] ss:$12 sps:$4 sm:$0xff]  }
 0x535   :  { %v1642_v61 = vpop.eup %1641 }
 0x536   :  { %v920_v41 = vadd.f32 1.0, %v1642_v61  ;;  %v1644_v4 = vpop.eup %1643  ;;  %v1696_v61 = vld [vmem:[#allocation2 + $0x94] ss:$12 sps:$4 sm:$0xff]  }
 0x537   :  { %v927_v16 = vadd.f32 1.0, %v1644_v4 }
 0x538   :  { %1645 = vrcp.f32 %v920_v41  ;;  %v1698_v41 = vld [vmem:[#allocation2 + $0xac] ss:$12 sps:$4 sm:$0xff]  }
 0x542   :  { %v1646_v43 = vpop.eup %1645 }
 0x543   :  { %v931_v3 = vmul.f32 %v1646_v43, %v930_v42  ;;  %v2263_v42 = vld [vmem:[#allocation7_spill] sm:$0xff] }
 0x545   :  { %v932_v46 = vadd.f32 %v931_v3, %v1967_v39  ;;  %v2172_v39 = vld [vmem:[#allocation2 + $0x1c] ss:$12 sps:$4 sm:$0xff]  }
 0x547   :  { %1647 = vtanh.f32 %v932_v46  ;;  %v2264_v46 = vld [vmem:[#allocation8_spill] sm:$0xff] }
 0x548   :  { %1649 = vrcp.f32 %v927_v16 }
 0x551   :  { %v1648_v11 = vpop.eup %1647 }
 0x552   :  { %v934_v2 = vsub.f32 %v2120_v31, %v1648_v11  ;;  %v1650_v37 = vpop.eup %1649 }
 0x554   :  { %v935_v0 = vmul.f32 %v1650_v37, %v934_v2 }
 0x556   :  { %v2164_v54 = vadd.f32 %v1648_v11, %v935_v0 }
 0x558   :  { %v937_v45 = vpack.c.bf16 %v2164_v54, %v2164_v54 }
 0x55a   :  { %971 = vmatmul.mubr.bf16.vlgmr.msra.gmra.mrb[36].mxu0 %v937_v45  ;;  %1512 = vmatmul.mubr.bf16.vlgmr.msra.gmra.mrb[28].mxu1 %v937_v45 }
 0x55b   :  { %1042 = vmatpush1.bf16.msra.mxu0 %v2168_v55  ;;  %1516 = vmatpush3.bf16.msra.mxu1 %v1826_v17 }
 0x55c   :  { %1043 = vmatprep.subr.bf16.mxu0 %v2172_v39  ;;  %1517 = vmatprep.subr.bf16.mxu1 %v2261_v50 }
 0x55d   :  { %1073 = vmatprep.mubr.bf16.mxu0 %v2262_v60  ;;  %1531 = vmatprep.mubr.msk.bf16.mxu1 %vm1728_vm1, %v2261_v50 }
 0x55f   :  { %1044 = vmatpush1.bf16.msra.mxu0 %v1796_v7  ;;  %1518 = vmatpush3.bf16.msra.mxu1 %v1830_v18  ;;  %v1683_v7 = vld [vmem:[#allocation2 + $0x4] ss:$12 sps:$4 sm:$0xff]  }
 0x560   :  { %1045 = vmatprep.subr.bf16.mxu0 %v1800_v8  ;;  %1519 = vmatprep.subr.bf16.mxu1 %v2261_v50 }
 0x563   :  { %1046 = vmatpush1.bf16.msra.mxu0 %v1805_v10  ;;  %1520 = vmatpush3.bf16.msra.mxu1 %v1844_v22 }
 0x564   :  { %1047 = vmatprep.subr.bf16.mxu0 %v1812_v12  ;;  %1521 = vmatprep.subr.bf16.mxu1 %v2261_v50 }
 0x567   :  { %1048 = vmatpush1.bf16.msra.mxu0 %v1815_v13  ;;  %1522 = vmatpush3.bf16.msra.mxu1 %v1857_v25 }
 0x568   :  { %1049 = vmatprep.subr.bf16.mxu0 %v1822_v15  ;;  %1523 = vmatprep.subr.bf16.mxu1 %v2261_v50 }
 0x56b   :  { %1050 = vmatpush1.bf16.msra.mxu0 %v1834_v19  ;;  %1524 = vmatpush3.bf16.msra.mxu1 %v1870_v28 }
 0x56c   :  { %1051 = vmatprep.subr.bf16.mxu0 %v1838_v20  ;;  %1525 = vmatprep.subr.bf16.mxu1 %v2261_v50 }
 0x56f   :  { %1052 = vmatpush1.bf16.msra.mxu0 %v1840_v21  ;;  %1526 = vmatpush3.bf16.msra.mxu1 %v1886_v32 }
 0x570   :  { %1053 = vmatprep.subr.bf16.mxu0 %v1852_v24  ;;  %1527 = vmatprep.subr.bf16.mxu1 %v2261_v50 }
 0x573   :  { %1054 = vmatpush1.bf16.msra.mxu0 %v1862_v26  ;;  %1528 = vmatpush3.bf16.msra.mxu1 %v1892_v33 }
 0x574   :  { %1055 = vmatprep.subr.bf16.mxu0 %v1866_v27  ;;  %1529 = vmatprep.subr.bf16.mxu1 %v2261_v50 }
 0x577   :  { %1056 = vmatpush1.bf16.msra.mxu0 %v1873_v29  ;;  %1530 = vmatpush3.bf16.msra.mxu1 %v1899_v34 }
 0x578   :  { %1144 = vmatprep.subr.bf16.mxu0 %v1683_v7  ;;  %1535 = vmatprep.subr.bf16.mxu1 %v2261_v50  ;;  %v2265_v7 = vld [vmem:[#allocation5_spill] sm:$0xff] }
 0x62d   :  { %v972_v8 = vpop.f32.mrb[36].mxu0  ;;  %v1013_v10 = vpop.f32.mrb[28].mxu1 }
 0x62e   :  { %v1019_v12 = vadd.f32 %v972_v8, %v1961_v23  ;;  %v974_v13 = vpop.f32.mrb[37].mxu0  ;;  %v1513_v15 = vpop.f32.mrb[29].mxu1  ;;  %v1033_v51 = vadd.f32 %v1984_v40, %v1013_v10 }
 0x62f   :  { %v1026_v17 = vadd.f32 %v974_v13, %v1963_v36  ;;  %v976_v18 = vpop.f32.mrb[38].mxu0  ;;  %v1016_v19 = vpop.f32.mrb[30].mxu1 }
 0x630   :  { %v1302_v20 = vmul.f32 -1.442695, %v1019_v12  ;;  %v977_v21 = vpop.f32.mrb[39].mxu0  ;;  %v1514_v22 = vpop.f32.mrb[31].mxu1 }
 0x631   :  { %v1303_v24 = vmul.f32 -1.442695, %v1026_v17  ;;  %v2266_v22 = vld [vmem:[#allocation9_spill] sm:$0xff] }
 0x632   :  { %1651 = vpow2.f32 %v1302_v20 }
 0x633   :  { %1653 = vpow2.f32 %v1303_v24 }
 0x63c   :  { %v1652_v26 = vpop.eup %1651 }
 0x63d   :  { %v1023_v27 = vadd.f32 1.0, %v1652_v26  ;;  %v1654_v57 = vpop.eup %1653 }
 0x63e   :  { %v1030_v47 = vadd.f32 1.0, %v1654_v57 }
 0x63f   :  { %1655 = vrcp.f32 %v1023_v27 }
 0x649   :  { %v1656_v58 = vpop.eup %1655 }
 0x64a   :  { %v1034_v23 = vmul.f32 %v1656_v58, %v1033_v51 }
 0x64c   :  { %v1035_v63 = vadd.f32 %v1034_v23, %v1971_v49  ;;  %v1685_v49 = vld [vmem:[#allocation2 + $0x18] ss:$12 sps:$4 sm:$0xff]  }
 0x64e   :  { %1657 = vtanh.f32 %v1035_v63 }
 0x64f   :  { %1659 = vrcp.f32 %v1030_v47 }
 0x658   :  { %v1658_v36 = vpop.eup %1657 }
 0x659   :  { %v1037_v53 = vsub.f32 %v2164_v54, %v1658_v36  ;;  %v1660_v31 = vpop.eup %1659 }
 0x65b   :  { %v1038_v30 = vmul.f32 %v1660_v31, %v1037_v53 }
 0x65d   :  { %v2211_v5 = vadd.f32 %v1658_v36, %v1038_v30 }
 0x65f   :  { %v1040_v6 = vpack.c.bf16 %v2211_v5, %v2211_v5 }
 0x661   :  { %1074 = vmatmul.mubr.bf16.vlgmr.msra.gmra.mrb[40].mxu0 %v1040_v6  ;;  %1532 = vmatmul.mubr.bf16.vlgmr.msra.gmra.mrb[32].mxu1 %v1040_v6 }
 0x662   :  { %1145 = vmatpush1.bf16.msra.mxu0 %v2168_v55  ;;  %1536 = vmatpush3.bf16.msra.mxu1 %v1684_v62 }
 0x663   :  { %1146 = vmatprep.subr.bf16.mxu0 %v2172_v39  ;;  %1537 = vmatprep.subr.bf16.mxu1 %v2261_v50 }
 0x664   :  { %1176 = vmatprep.mubr.bf16.mxu0 %v2262_v60  ;;  %1551 = vmatprep.mubr.msk.bf16.mxu1 %vm1728_vm1, %v2261_v50  ;;  %v1691_v60 = vld [vmem:[#allocation2 + $0x48] ss:$12 sps:$4 sm:$0xff]  }
 0x666   :  { %1147 = vmatpush1.bf16.msra.mxu0 %v1685_v49  ;;  %1538 = vmatpush3.bf16.msra.mxu1 %v1686_v38  ;;  %v2267_v49 = vld [vmem:[#allocation6_spill] sm:$0xff] }
 0x667   :  { %1148 = vmatprep.subr.bf16.mxu0 %v1687_v48  ;;  %1539 = vmatprep.subr.bf16.mxu1 %v2261_v50 }
 0x66a   :  { %1149 = vmatpush1.bf16.msra.mxu0 %v1688_v1  ;;  %1540 = vmatpush3.bf16.msra.mxu1 %v1689_v59 }
 0x66b   :  { %1150 = vmatprep.subr.bf16.mxu0 %v1690_v44  ;;  %1541 = vmatprep.subr.bf16.mxu1 %v2261_v50 }
 0x66e   :  { %1151 = vmatpush1.bf16.msra.mxu0 %v1691_v60  ;;  %1542 = vmatpush3.bf16.msra.mxu1 %v1857_v25  ;;  %v1697_v25 = vld [vmem:[#allocation2 + $0x90] ss:$12 sps:$4 sm:$0xff]  }
 0x66f   :  { %1152 = vmatprep.subr.bf16.mxu0 %v1692_v14  ;;  %1543 = vmatprep.subr.bf16.mxu1 %v2261_v50 }
 0x672   :  { %1153 = vmatpush1.bf16.msra.mxu0 %v1693_v35  ;;  %1544 = vmatpush3.bf16.msra.mxu1 %v1870_v28 }
 0x673   :  { %1154 = vmatprep.subr.bf16.mxu0 %v1694_v52  ;;  %1545 = vmatprep.subr.bf16.mxu1 %v2261_v50 }
 0x676   :  { %1155 = vmatpush1.bf16.msra.mxu0 %v1695_v56  ;;  %1546 = vmatpush3.bf16.msra.mxu1 %v1886_v32 }
 0x677   :  { %1156 = vmatprep.subr.bf16.mxu0 %v1696_v61  ;;  %1547 = vmatprep.subr.bf16.mxu1 %v2261_v50 }
 0x67a   :  { %1157 = vmatpush1.bf16.msra.mxu0 %v1697_v25  ;;  %1548 = vmatpush3.bf16.msra.mxu1 %v1892_v33 }
 0x67b   :  { %1158 = vmatprep.subr.bf16.mxu0 %v1698_v41  ;;  %1549 = vmatprep.subr.bf16.mxu1 %v2261_v50 }
 0x67e   :  { %1159 = vmatpush1.bf16.msra.mxu0 %v1873_v29  ;;  %1550 = vmatpush3.bf16.msra.mxu1 %v1899_v34 }
 0x734   :  { %v1075_v28 = vpop.f32.mrb[40].mxu0  ;;  %v1116_v4 = vpop.f32.mrb[32].mxu1 }
 0x735   :  { %v1122_v32 = vadd.f32 %v1075_v28, %v2263_v42  ;;  %v1077_v43 = vpop.f32.mrb[41].mxu0  ;;  %v1533_v3 = vpop.f32.mrb[33].mxu1  ;;  %v1136_v34 = vadd.f32 %v1984_v40, %v1116_v4 }
 0x736   :  { %v1129_v16 = vadd.f32 %v1077_v43, %v2264_v46  ;;  %v1079_v11 = vpop.f32.mrb[42].mxu0  ;;  %v1119_v2 = vpop.f32.mrb[34].mxu1 }
 0x737   :  { %v1304_v37 = vmul.f32 -1.442695, %v1122_v32  ;;  %v1080_v33 = vpop.f32.mrb[43].mxu0  ;;  %v1534_v0 = vpop.f32.mrb[35].mxu1 }
 0x738   :  { %v1305_v54 = vmul.f32 -1.442695, %v1129_v16 }
 0x739   :  { %1661 = vpow2.f32 %v1304_v37 }
 0x73a   :  { %1663 = vpow2.f32 %v1305_v54 }
 0x743   :  { %v1662_v50 = vpop.eup %1661 }
 0x744   :  { %v1126_v45 = vadd.f32 1.0, %v1662_v50  ;;  %v1664_v29 = vpop.eup %1663 }
 0x745   :  { %v1133_v10 = vadd.f32 1.0, %v1664_v29 }
 0x746   :  { %1665 = vrcp.f32 %v1126_v45 }
 0x750   :  { %v1666_v55 = vpop.eup %1665 }
 0x751   :  { %v1137_v39 = vmul.f32 %v1666_v55, %v1136_v34 }
 0x753   :  { %v1138_v8 = vadd.f32 %v1137_v39, %v2265_v7 }
 0x755   :  { %1667 = vtanh.f32 %v1138_v8 }
 0x756   :  { %1669 = vrcp.f32 %v1133_v10 }
 0x75f   :  { %v1668_v12 = vpop.eup %1667 }
 0x760   :  { %v1140_v13 = vsub.f32 %v2211_v5, %v1668_v12  ;;  %v1670_v15 = vpop.eup %1669 }
 0x762   :  { %v1141_v17 = vmul.f32 %v1670_v15, %v1140_v13 }
 0x764   :  { %v1142_v18 = vadd.f32 %v1668_v12, %v1141_v17 }
 0x766   :  { %v1143_v19 = vpack.c.bf16 %v1142_v18, %v1142_v18 }
 0x768   :  { %1177 = vmatmul.mubr.bf16.vlgmr.msra.gmra.mrb[44].mxu0 %v1143_v19  ;;  %1552 = vmatmul.mubr.bf16.vlgmr.msra.gmra.mrb[36].mxu1 %v1143_v19 }
 0x83b   :  { %v1178_v20 = vpop.f32.mrb[44].mxu0  ;;  %v1219_v21 = vpop.f32.mrb[36].mxu1 }
 0x83c   :  { %v1225_v24 = vadd.f32 %v1178_v20, %v2266_v22  ;;  %v1180_v26 = vpop.f32.mrb[45].mxu0  ;;  %v1553_v27 = vpop.f32.mrb[37].mxu1  ;;  %v1239_v5 = vadd.f32 %v1984_v40, %v1219_v21 }
 0x83d   :  { %v1232_v57 = vadd.f32 %v1180_v26, %v1979_v9  ;;  %v1182_v51 = vpop.f32.mrb[46].mxu0  ;;  %v1222_v58 = vpop.f32.mrb[38].mxu1 }
 0x83e   :  { %v1306_v23 = vmul.f32 -1.442695, %v1225_v24  ;;  %v1183_v63 = vpop.f32.mrb[47].mxu0  ;;  %v1554_v47 = vpop.f32.mrb[39].mxu1 }
 0x83f   :  { %v1307_v36 = vmul.f32 -1.442695, %v1232_v57 }
 0x840   :  { %1671 = vpow2.f32 %v1306_v23 }
 0x841   :  { %1673 = vpow2.f32 %v1307_v36 }
 0x84a   :  { %v1672_v53 = vpop.eup %1671 }
 0x84b   :  { %v1229_v31 = vadd.f32 1.0, %v1672_v53  ;;  %v1674_v30 = vpop.eup %1673 }
 0x84c   :  { %v1236_v48 = vadd.f32 1.0, %v1674_v30 }
 0x84d   :  { %1675 = vrcp.f32 %v1229_v31 }
 0x857   :  { %v1676_v6 = vpop.eup %1675 }
 0x858   :  { %v1240_v62 = vmul.f32 %v1676_v6, %v1239_v5 }
 0x85a   :  { %v1241_v38 = vadd.f32 %v1240_v62, %v2267_v49 }
 0x85c   :  { %1677 = vtanh.f32 %v1241_v38 }
 0x85d   :  { %1679 = vrcp.f32 %v1236_v48 }
 0x866   :  { %v1678_v9 = vpop.eup %1677 }
 0x867   :  { %v1243_v1 = vsub.f32 %v1142_v18, %v1678_v9  ;;  %v1680_v59 = vpop.eup %1679 }
 0x869   :  { %v1244_v44 = vmul.f32 %v1680_v59, %v1243_v1 }
 0x86b   :  { %v1245_v60 = vadd.f32 %v1678_v9, %v1244_v44 }
 0x86d   :  { %1246 = vst [vmem:[%s2251_s6] sm:$0xff] %v1245_v60 }
 0x86e   :  { %1251 = vsyncpa [#allocation3], 1 }

</bundles_post_ra>
